<compile_context>
chip_gen: v6e
topology: v6e:2x2x1
jax: 0.10.0
libtpu: 0.0.40
codegen_flags: <defaults>
</compile_context>

<pallas_src>
import jax
import jax.numpy as jnp
from jax.experimental import pallas as pl
from jax.experimental.pallas import tpu as pltpu

_HEADS_VMEM = 40 << 20   # ~15.6 MiB resident head weights + headroom (< v7x 64 MiB/TC)
_CHAIN_VMEM = 16 << 20   # encoder/decoder weights are < 1 MiB; explicit for v5e default


def _full_spec(shape):
    nd = len(shape)
    return pl.BlockSpec(shape, lambda *_: (0,) * nd)


def _resident_spec(shape):
    # Grid-invariant operand (weights/biases): full block, single-buffered.
    # Double-buffering buys no overlap for an invariant index_map but doubles VMEM.
    nd = len(shape)
    return pl.BlockSpec(shape, lambda *_: (0,) * nd, pipeline_mode=pl.Buffered(1))


def _dot(h, w, b):
    """Linear layer: bf16 weights (bf16-cast activations) on the MXU, f32
    accumulation via preferred_element_type, f32 bias add."""
    return jnp.dot(h.astype(w.dtype), w, preferred_element_type=jnp.float32) + b


# ----------------------------------------------------------------------------
# Kernels 1 & 3: a stack of Linear(+identity Dropout) layers, one batch
# element per grid step ("parallel" -> balanced megacore split for even B).
# ----------------------------------------------------------------------------
def _make_chain_kernel(num_layers):
    def kernel(x_ref, *refs):
        o_ref = refs[-1]
        h = x_ref[...]                                   # (S, d_in) f32
        for l in range(num_layers):
            h = _dot(h, refs[2 * l][...], refs[2 * l + 1][...])
        o_ref[...] = h.astype(o_ref.dtype)
    return kernel


def mlp_chain(x, params, *, vmem_limit=_CHAIN_VMEM):
    """x: (B, S, d_in) f32; params: list of (W bf16 (d_in, d_out), b f32 (1, d_out))."""
    B, S, d_in = x.shape
    d_out = params[-1][0].shape[1]

    args = [x]
    in_specs = [pl.BlockSpec((None, S, d_in), lambda i: (i, 0, 0))]
    for (w, b) in params:
        args += [w, b]
        in_specs += [_resident_spec(w.shape), _resident_spec(b.shape)]

    return pl.pallas_call(
        _make_chain_kernel(len(params)),
        grid=(B,),
        in_specs=in_specs,
        out_specs=pl.BlockSpec((None, S, d_out), lambda i: (i, 0, 0)),
        out_shape=jax.ShapeDtypeStruct((B, S, d_out), jnp.float32),
        compiler_params=pltpu.CompilerParams(
            dimension_semantics=("parallel",),
            vmem_limit_bytes=vmem_limit),
    )(*args)


# ----------------------------------------------------------------------------
# Kernel 2: fused fc_mu + fc_var + reparameterize + Posterior_Y + fusion chain
# ----------------------------------------------------------------------------
def _make_heads_kernel(d_mu1, n_mu_rest, n_var_rest, n_py, n_fusion_rest):
    def kernel(lat_ref, y_ref, eps_ref, *refs):
        muvar_ref, zout_ref = refs[-2], refs[-1]
        w_refs = refs[:-2]
        pos = [0]

        def nxt():
            r = w_refs[pos[0]][...]
            pos[0] += 1
            return r

        def chain(h, n):
            for _ in range(n):
                w = nxt()
                b = nxt()
                h = _dot(h, w, b)
            return h

        lat = lat_ref[...]                               # (B, 1920) f32, loaded once

        # fc_mu / fc_var identical first layers fused into one (1920, 2048) matmul.
        w1f = nxt()
        b1f = nxt()
        h1 = _dot(lat, w1f, b1f)                         # (B, 2048)
        mu = chain(h1[:, :d_mu1], n_mu_rest)             # (B, 32)
        lv = chain(h1[:, d_mu1:], n_var_rest)            # (B, 32)

        # Lane-dense (B, 64) slab written with two slice stores (no concat/XLU).
        muvar_ref[:, :mu.shape[1]] = mu
        muvar_ref[:, mu.shape[1]:] = lv

        # reparameterize: z = eps * exp(0.5 * log_var) + mu   (f32, EUP exp)
        z = eps_ref[...] * jnp.exp(0.5 * lv) + mu

        py = chain(y_ref[...], n_py)                     # Posterior_Y_embedding: (B, 32)

        # fusion layer 1 with torch.cat([z, post_y]) folded into a weight split:
        # cat([z, py]) @ W == z @ W[:32] + py @ W[32:]
        wz = nxt()
        wp = nxt()
        b1 = nxt()
        h = (jnp.dot(z.astype(wz.dtype), wz, preferred_element_type=jnp.float32)
             + jnp.dot(py.astype(wp.dtype), wp, preferred_element_type=jnp.float32)
             + b1)
        h = chain(h, n_fusion_rest)                      # (B, 1920)
        zout_ref[...] = h.astype(zout_ref.dtype)
    return kernel


def heads_forward(lat, y, eps, hp):
    B = lat.shape[0]
    flat = hp["flat"]
    d_fused = hp["d_fused"]

    args = [lat, y, eps] + flat
    in_specs = ([_full_spec(lat.shape), _full_spec(y.shape), _full_spec(eps.shape)]
                + [_resident_spec(a.shape) for a in flat])

    muvar, z_fused = pl.pallas_call(
        _make_heads_kernel(hp["d_mu1"], hp["n_mu_rest"], hp["n_var_rest"],
                           hp["n_py"], hp["n_fusion_rest"]),
        grid=(1,),
        in_specs=in_specs,
        out_specs=(_full_spec((B, 64)), _full_spec((B, d_fused))),
        out_shape=(jax.ShapeDtypeStruct((B, 64), jnp.float32),
                   jax.ShapeDtypeStruct((B, d_fused), jnp.float32)),
        compiler_params=pltpu.CompilerParams(
            dimension_semantics=("arbitrary",),
            vmem_limit_bytes=_HEADS_VMEM),
    )(*args)
    return muvar[:, :32], muvar[:, 32:], z_fused


# ----------------------------------------------------------------------------
# One-time parameter preprocessing (call once, outside the per-step path).
# ----------------------------------------------------------------------------
def prepare_params(params):
    mu, var = params["fc_mu"], params["fc_var"]
    py, fus = params["post_y"], params["fusion"]

    # Fuse the identical-shape first layers of fc_mu / fc_var along N.
    w1f = jnp.concatenate([mu[0][0], var[0][0]], axis=1)   # (1920, 2048) bf16
    b1f = jnp.concatenate([mu[0][1], var[0][1]], axis=1)   # (1, 2048) f32

    # Split the first fusion weight so the concat([z, post_y]) disappears.
    wf1, bf1 = fus[0]
    d_z = 32
    wz, wp = wf1[:d_z], wf1[d_z:]                          # (32, 256) each

    flat = [w1f, b1f]
    for (w, b) in (mu[1:] + var[1:] + py):
        flat += [w, b]
    flat += [wz, wp, bf1]
    for (w, b) in fus[1:]:
        flat += [w, b]

    heads = dict(flat=flat,
                 d_mu1=mu[0][0].shape[1],
                 n_mu_rest=len(mu) - 1,
                 n_var_rest=len(var) - 1,
                 n_py=len(py),
                 n_fusion_rest=len(fus) - 1,
                 d_fused=fus[-1][0].shape[1])
    return {"encoder": params["encoder"], "decoder": params["decoder"], "heads": heads}


# ----------------------------------------------------------------------------
# Deterministic parameter init (PyTorch Linear default: U(-1/sqrt(in), 1/sqrt(in)))
# ----------------------------------------------------------------------------
def init_linear(key, d_in, d_out):
    kw, kb = jax.random.split(key)
    bound = 1.0 / (d_in ** 0.5)
    w = jax.random.uniform(kw, (d_in, d_out), jnp.float32, -bound, bound)
    b = jax.random.uniform(kb, (1, d_out), jnp.float32, -bound, bound)
    return w.astype(jnp.bfloat16), b                       # bf16 weights, f32 biases


def init_chain(key, dims):
    keys = jax.random.split(key, len(dims) - 1)
    return [init_linear(k, dims[i], dims[i + 1]) for i, k in enumerate(keys)]


# ----------------------------------------------------------------------------
# Forward pass of MLP_Reconstruct_v2
# ----------------------------------------------------------------------------
def mlp_reconstruct_v2_forward(prepared, x, y, eps):
    """x: (B, 60, 512), y: (B, 8), eps: (B, 32) ~ N(0,1) reparameterization noise.
    Returns (output (B, 60, 512), mu (B, 32), log_var (B, 32))."""
    B = x.shape[0]

    # Encoder: per-row Linear stack (B, 60, 512) -> (B, 60, 32).
    lat = mlp_chain(x, prepared["encoder"])
    lat = lat.reshape(B, -1)                               # (B, 1920), ~15 KB relayout

    # Fused heads: fc_mu, fc_var, reparameterize, post_y embedding, fusion chain.
    mu, log_var, z = heads_forward(lat, y, eps, prepared["heads"])   # z: (B, 1920)

    # Decoder: per-row Linear stack (B, 60, 32) -> (B, 60, 512).
    out = mlp_chain(z.reshape(B, 60, 32), prepared["decoder"])
    return out, mu, log_var


if __name__ == "__main__":
    key = jax.random.PRNGKey(0)
    k_params, k_x, k_y, k_eps = jax.random.split(key, 4)
    kk = jax.random.split(k_params, 6)

    params = {
        "encoder": init_chain(kk[0], [512, 512, 256, 128, 64, 32]),
        "post_y":  init_chain(kk[1], [8, 16, 32]),
        "fc_mu":   init_chain(kk[2], [60 * 32, 1024, 512, 256, 64, 32]),
        "fc_var":  init_chain(kk[3], [60 * 32, 1024, 512, 256, 64, 32]),
        "decoder": init_chain(kk[4], [32, 64, 128, 256, 512, 512]),
        "fusion":  init_chain(kk[5], [64, 256, 512, 1024, 60 * 32]),
    }
    prepared = prepare_params(params)                      # one-time weight prep

    B = 2  # small batch; seq=60 and feat=512 are dictated by the module itself
    x = jax.random.normal(k_x, (B, 60, 512), jnp.float32)
    y = jax.random.normal(k_y, (B, 8), jnp.float32)
    eps = jax.random.normal(k_eps, (B, 32), jnp.float32)   # randn_like(std), fixed seed

    out, mu, log_var = mlp_reconstruct_v2_forward(prepared, x, y, eps)
    jax.block_until_ready((out, mu, log_var))

    assert out.shape == (B, 60, 512)
    assert mu.shape == (B, 32) and log_var.shape == (B, 32)
    assert jnp.all(jnp.isfinite(out)) and jnp.all(jnp.isfinite(mu)) and jnp.all(jnp.isfinite(log_var))
    print("KERNEL_OK")
</pallas_src>

<mosaic_0001>
module attributes {stable_mosaic.version = 11 : i64} {
  func.func @kernel(%arg0: i32, %arg1: memref<1x60x512xf32, #tpu.memory_space<vmem>>, %arg2: memref<512x512xbf16, #tpu.memory_space<vmem>>, %arg3: memref<1x512xf32, #tpu.memory_space<vmem>>, %arg4: memref<512x256xbf16, #tpu.memory_space<vmem>>, %arg5: memref<1x256xf32, #tpu.memory_space<vmem>>, %arg6: memref<256x128xbf16, #tpu.memory_space<vmem>>, %arg7: memref<1x128xf32, #tpu.memory_space<vmem>>, %arg8: memref<128x64xbf16, #tpu.memory_space<vmem>>, %arg9: memref<1x64xf32, #tpu.memory_space<vmem>>, %arg10: memref<64x32xbf16, #tpu.memory_space<vmem>>, %arg11: memref<1x32xf32, #tpu.memory_space<vmem>>, %arg12: memref<1x60x32xf32, #tpu.memory_space<vmem>>) attributes {dimension_semantics = [#tpu.dimension_semantics<parallel>], iteration_bounds = array<i64: 2>, scalar_prefetch = 0 : i64, scratch_operands = 0 : i64, tpu.core_type = #tpu.core_type<tc>, window_params = [{transform_indices = @transform_0, window_bounds = array<i64: 1, 60, 512>}, {pipeline_mode = #tpu.pipeline_mode<synchronous>, transform_indices = @transform_1, window_bounds = array<i64: 512, 512>}, {pipeline_mode = #tpu.pipeline_mode<synchronous>, transform_indices = @transform_2, window_bounds = array<i64: 1, 512>}, {pipeline_mode = #tpu.pipeline_mode<synchronous>, transform_indices = @transform_3, window_bounds = array<i64: 512, 256>}, {pipeline_mode = #tpu.pipeline_mode<synchronous>, transform_indices = @transform_4, window_bounds = array<i64: 1, 256>}, {pipeline_mode = #tpu.pipeline_mode<synchronous>, transform_indices = @transform_5, window_bounds = array<i64: 256, 128>}, {pipeline_mode = #tpu.pipeline_mode<synchronous>, transform_indices = @transform_6, window_bounds = array<i64: 1, 128>}, {pipeline_mode = #tpu.pipeline_mode<synchronous>, transform_indices = @transform_7, window_bounds = array<i64: 128, 64>}, {pipeline_mode = #tpu.pipeline_mode<synchronous>, transform_indices = @transform_8, window_bounds = array<i64: 1, 64>}, {pipeline_mode = #tpu.pipeline_mode<synchronous>, transform_indices = @transform_9, window_bounds = array<i64: 64, 32>}, {pipeline_mode = #tpu.pipeline_mode<synchronous>, transform_indices = @transform_10, window_bounds = array<i64: 1, 32>}, {transform_indices = @transform_11, window_bounds = array<i64: 1, 60, 32>}]} {
    %c0 = arith.constant 0 : index
    %c0_0 = arith.constant 0 : index
    %c0_1 = arith.constant 0 : index
    %0 = vector.load %arg1[%c0, %c0_0, %c0_1] : memref<1x60x512xf32, #tpu.memory_space<vmem>>, vector<1x60x512xf32>
    %1 = vector.shape_cast %0 : vector<1x60x512xf32> to vector<60x512xf32>
    %c0_2 = arith.constant 0 : index
    %c0_3 = arith.constant 0 : index
    %2 = vector.load %arg2[%c0_2, %c0_3] : memref<512x512xbf16, #tpu.memory_space<vmem>>, vector<512x512xbf16>
    %c0_4 = arith.constant 0 : index
    %c0_5 = arith.constant 0 : index
    %3 = vector.load %arg3[%c0_4, %c0_5] : memref<1x512xf32, #tpu.memory_space<vmem>>, vector<1x512xf32>
    %4 = arith.truncf %1 : vector<60x512xf32> to vector<60x512xbf16>
    %cst = arith.constant dense<0.000000e+00> : vector<60x512xf32>
    %5 = tpu.matmul %4, %2, %cst {dimension_numbers = #tpu.dot_dimension_numbers<[1], [0], [0], [1], [0, 0, 1, 1], [], []>} : vector<60x512xbf16>, vector<512x512xbf16>, vector<60x512xf32> -> vector<60x512xf32>
    %6 = vector.broadcast %3 : vector<1x512xf32> to vector<60x512xf32>
    %7 = arith.addf %5, %6 : vector<60x512xf32>
    %c0_6 = arith.constant 0 : index
    %c0_7 = arith.constant 0 : index
    %8 = vector.load %arg4[%c0_6, %c0_7] : memref<512x256xbf16, #tpu.memory_space<vmem>>, vector<512x256xbf16>
    %c0_8 = arith.constant 0 : index
    %c0_9 = arith.constant 0 : index
    %9 = vector.load %arg5[%c0_8, %c0_9] : memref<1x256xf32, #tpu.memory_space<vmem>>, vector<1x256xf32>
    %10 = arith.truncf %7 : vector<60x512xf32> to vector<60x512xbf16>
    %cst_10 = arith.constant dense<0.000000e+00> : vector<60x256xf32>
    %11 = tpu.matmul %10, %8, %cst_10 {dimension_numbers = #tpu.dot_dimension_numbers<[1], [0], [0], [1], [0, 0, 1, 1], [], []>} : vector<60x512xbf16>, vector<512x256xbf16>, vector<60x256xf32> -> vector<60x256xf32>
    %12 = vector.broadcast %9 : vector<1x256xf32> to vector<60x256xf32>
    %13 = arith.addf %11, %12 : vector<60x256xf32>
    %c0_11 = arith.constant 0 : index
    %c0_12 = arith.constant 0 : index
    %14 = vector.load %arg6[%c0_11, %c0_12] : memref<256x128xbf16, #tpu.memory_space<vmem>>, vector<256x128xbf16>
    %c0_13 = arith.constant 0 : index
    %c0_14 = arith.constant 0 : index
    %15 = vector.load %arg7[%c0_13, %c0_14] : memref<1x128xf32, #tpu.memory_space<vmem>>, vector<1x128xf32>
    %16 = arith.truncf %13 : vector<60x256xf32> to vector<60x256xbf16>
    %cst_15 = arith.constant dense<0.000000e+00> : vector<60x128xf32>
    %17 = tpu.matmul %16, %14, %cst_15 {dimension_numbers = #tpu.dot_dimension_numbers<[1], [0], [0], [1], [0, 0, 1, 1], [], []>} : vector<60x256xbf16>, vector<256x128xbf16>, vector<60x128xf32> -> vector<60x128xf32>
    %18 = vector.broadcast %15 : vector<1x128xf32> to vector<60x128xf32>
    %19 = arith.addf %17, %18 : vector<60x128xf32>
    %c0_16 = arith.constant 0 : index
    %c0_17 = arith.constant 0 : index
    %20 = vector.load %arg8[%c0_16, %c0_17] : memref<128x64xbf16, #tpu.memory_space<vmem>>, vector<128x64xbf16>
    %c0_18 = arith.constant 0 : index
    %c0_19 = arith.constant 0 : index
    %21 = vector.load %arg9[%c0_18, %c0_19] : memref<1x64xf32, #tpu.memory_space<vmem>>, vector<1x64xf32>
    %22 = arith.truncf %19 : vector<60x128xf32> to vector<60x128xbf16>
    %cst_20 = arith.constant dense<0.000000e+00> : vector<60x64xf32>
    %23 = tpu.matmul %22, %20, %cst_20 {dimension_numbers = #tpu.dot_dimension_numbers<[1], [0], [0], [1], [0, 0, 1, 1], [], []>} : vector<60x128xbf16>, vector<128x64xbf16>, vector<60x64xf32> -> vector<60x64xf32>
    %24 = vector.broadcast %21 : vector<1x64xf32> to vector<60x64xf32>
    %25 = arith.addf %23, %24 : vector<60x64xf32>
    %c0_21 = arith.constant 0 : index
    %c0_22 = arith.constant 0 : index
    %26 = vector.load %arg10[%c0_21, %c0_22] : memref<64x32xbf16, #tpu.memory_space<vmem>>, vector<64x32xbf16>
    %c0_23 = arith.constant 0 : index
    %c0_24 = arith.constant 0 : index
    %27 = vector.load %arg11[%c0_23, %c0_24] : memref<1x32xf32, #tpu.memory_space<vmem>>, vector<1x32xf32>
    %28 = arith.truncf %25 : vector<60x64xf32> to vector<60x64xbf16>
    %cst_25 = arith.constant dense<0.000000e+00> : vector<60x32xf32>
    %29 = tpu.matmul %28, %26, %cst_25 {dimension_numbers = #tpu.dot_dimension_numbers<[1], [0], [0], [1], [0, 0, 1, 1], [], []>} : vector<60x64xbf16>, vector<64x32xbf16>, vector<60x32xf32> -> vector<60x32xf32>
    %30 = vector.broadcast %27 : vector<1x32xf32> to vector<60x32xf32>
    %31 = arith.addf %29, %30 : vector<60x32xf32>
    %c0_26 = arith.constant 0 : index
    %c0_27 = arith.constant 0 : index
    %c0_28 = arith.constant 0 : index
    %32 = vector.load %arg12[%c0_26, %c0_27, %c0_28] : memref<1x60x32xf32, #tpu.memory_space<vmem>>, vector<1x60x32xf32>
    %33 = vector.shape_cast %32 : vector<1x60x32xf32> to vector<60x32xf32>
    %34 = vector.shape_cast %31 : vector<60x32xf32> to vector<1x60x32xf32>
    tpu.vector_store %arg12[%c0_26, %c0_27, %c0_28], %34 {strides = array<i32>} : memref<1x60x32xf32, #tpu.memory_space<vmem>>, vector<1x60x32xf32>,
    return
  }
  func.func @transform_0(%arg0: i32) -> (i32, i32, i32) {
    %c0_i32 = arith.constant 0 : i32
    %c0_i32_0 = arith.constant 0 : i32
    %c0_i32_1 = arith.constant 0 : i32
    return %arg0, %c0_i32, %c0_i32_0 : i32, i32, i32
  }
  func.func @transform_1(%arg0: i32) -> (i32, i32) {
    %c0_i32 = arith.constant 0 : i32
    %c0_i32_0 = arith.constant 0 : i32
    %c0_i32_1 = arith.constant 0 : i32
    return %c0_i32, %c0_i32_0 : i32, i32
  }
  func.func @transform_2(%arg0: i32) -> (i32, i32) {
    %c0_i32 = arith.constant 0 : i32
    %c0_i32_0 = arith.constant 0 : i32
    %c0_i32_1 = arith.constant 0 : i32
    return %c0_i32, %c0_i32_0 : i32, i32
  }
  func.func @transform_3(%arg0: i32) -> (i32, i32) {
    %c0_i32 = arith.constant 0 : i32
    %c0_i32_0 = arith.constant 0 : i32
    %c0_i32_1 = arith.constant 0 : i32
    return %c0_i32, %c0_i32_0 : i32, i32
  }
  func.func @transform_4(%arg0: i32) -> (i32, i32) {
    %c0_i32 = arith.constant 0 : i32
    %c0_i32_0 = arith.constant 0 : i32
    %c0_i32_1 = arith.constant 0 : i32
    return %c0_i32, %c0_i32_0 : i32, i32
  }
  func.func @transform_5(%arg0: i32) -> (i32, i32) {
    %c0_i32 = arith.constant 0 : i32
    %c0_i32_0 = arith.constant 0 : i32
    %c0_i32_1 = arith.constant 0 : i32
    return %c0_i32, %c0_i32_0 : i32, i32
  }
  func.func @transform_6(%arg0: i32) -> (i32, i32) {
    %c0_i32 = arith.constant 0 : i32
    %c0_i32_0 = arith.constant 0 : i32
    %c0_i32_1 = arith.constant 0 : i32
    return %c0_i32, %c0_i32_0 : i32, i32
  }
  func.func @transform_7(%arg0: i32) -> (i32, i32) {
    %c0_i32 = arith.constant 0 : i32
    %c0_i32_0 = arith.constant 0 : i32
    %c0_i32_1 = arith.constant 0 : i32
    return %c0_i32, %c0_i32_0 : i32, i32
  }
  func.func @transform_8(%arg0: i32) -> (i32, i32) {
    %c0_i32 = arith.constant 0 : i32
    %c0_i32_0 = arith.constant 0 : i32
    %c0_i32_1 = arith.constant 0 : i32
    return %c0_i32, %c0_i32_0 : i32, i32
  }
  func.func @transform_9(%arg0: i32) -> (i32, i32) {
    %c0_i32 = arith.constant 0 : i32
    %c0_i32_0 = arith.constant 0 : i32
    %c0_i32_1 = arith.constant 0 : i32
    return %c0_i32, %c0_i32_0 : i32, i32
  }
  func.func @transform_10(%arg0: i32) -> (i32, i32) {
    %c0_i32 = arith.constant 0 : i32
    %c0_i32_0 = arith.constant 0 : i32
    %c0_i32_1 = arith.constant 0 : i32
    return %c0_i32, %c0_i32_0 : i32, i32
  }
  func.func @transform_11(%arg0: i32) -> (i32, i32, i32) {
    %c0_i32 = arith.constant 0 : i32
    %c0_i32_0 = arith.constant 0 : i32
    %c0_i32_1 = arith.constant 0 : i32
    return %arg0, %c0_i32, %c0_i32_0 : i32, i32, i32
  }
}

</mosaic_0001>

<bundles_post_ra>
// kernel: tpu_custom_call.1
= control target key start
LH: loop header
LB: loop body
LE: loop exit
PB: predicated region body
PF: predicated region fallthrough
CT: control target
= control target key end

     0   :  { %16 = vsyncpa [#allocation3], 0  ;;  %s4159_s0 = inlined_call_operand.vmem [shape: f32[2,60,512], index: 0, kind: input, shape index: {}]   ;;  %s4160_s1 = inlined_call_operand.vmem [shape: bf16[512,512], index: 1, kind: input, shape index: {}]   ;;  %s4161_s2 = inlined_call_operand.vmem [shape: f32[1,512], index: 2, kind: input, shape index: {}]   ;;  %s4162_s3 = inlined_call_operand.hbm [shape: bf16[512,256], index: 3, kind: input, shape index: {}]   ;;  %s4163_s4 = inlined_call_operand.vmem [shape: f32[1,256], index: 4, kind: input, shape index: {}]   ;;  %s4164_s5 = inlined_call_operand.hbm [shape: bf16[256,128], index: 5, kind: input, shape index: {}]   ;;  %s4165_s6 = inlined_call_operand.vmem [shape: f32[1,128], index: 6, kind: input, shape index: {}]   ;;  %s4166_s7 = inlined_call_operand.vmem [shape: bf16[128,64], index: 7, kind: input, shape index: {}]   ;;  %s4167_s8 = inlined_call_operand.vmem [shape: f32[1,64], index: 8, kind: input, shape index: {}]   ;;  %s4168_s9 = inlined_call_operand.vmem [shape: bf16[64,32], index: 9, kind: input, shape index: {}]   ;;  %s4169_s10 = inlined_call_operand.vmem [shape: f32[1,32], index: 10, kind: input, shape index: {}]   ;;  %s4170_s11 = inlined_call_operand.vmem [shape: f32[2,60,32], index: 11, kind: output, shape index: {}]  }
   0x1   :  { %17 = vsyncpa [#allocation5], 0  ;;  %s3489_s17 = smov 0  }
   0x2 LB: > { %s3423_s18 = smov [#allocation2]   ;;  %s3495_s20 = sadd.s32 4294967295, %s3421_s17   ;;  %s3421_s17 = sphi %s3489_s17, %s23_s17  }
   0x3   : > { %s308_s19 = sshll.u32 %s3423_s18, 4  ;;  %p2664_p0 = scmp.ge.s32.totalorder %s3421_s17, 1  ;;  %s309_s19 = int_to_ptr.vmem [resolvable:$true] %s308_s19 }
   0x4   : > { %p290_p1 = scmp.lt.s32.totalorder %s3421_s17, 3  ;;  %p3021_p3 = scmp.eq.s32.totalorder %s3495_s20, 0 }
   0x5   : > { %s3424_s22 = smov [#allocation4]   ;;  %s3366_s25 = scalar_lea.vmem %s309_s19, 8192 }
   0x6   : > { %p3499_p2 = pnand %p2664_p0, %p290_p1  ;;  %s324_s23 = sshll.u32 %s3424_s22, 4  ;;  %s325_s23 = int_to_ptr.vmem [resolvable:$true] %s324_s23 }
   0x7   : > { %p3367_p7 = scmp.ne.s32.totalorder %s309_s19, %s3366_s25  ;;  %p3374_p10 = scmp.lt.s32.totalorder %s309_s19, %s309_s19 }
   0x8   : > { %p3014_p4 = pneg %p3499_p2  ;;  %p3375_p11 = scmp.lt.s32.totalorder %s3366_s25, %s3366_s25 }
   0xa   : > { %p3508_p5 = pnand %p3021_p3, %p3014_p4  ;;  %p3376_p12 = por %p3375_p11, %p3374_p10 }
   0xc   : > { %p3357_p6 = pneg %p3508_p5 }
   0xe   : > { %p3369_p8 = pnand %p3367_p7, %p3357_p6 }
  0x10   : > { %p3370_p9 = pneg %p3369_p8 }
  0x12   : > { %p3377_p13 = pnand %p3376_p12, %p3370_p9 }
  0x14   : > { %3380 = shalt.err (!%p3377_p13)
}
  0x15   : > { %s3425_s26 = smov 128   ;;  %s3426_s27 = smov 8  }
  0x16   : > { %3017 = dma.hbm_to_vmem [thread:$0]  (!%p3508_p5), %s4162_s3, 8192, %s309_s19, [#allocation3], %s3425_s26, %s3425_s26, %s3426_s27  }
  0x17   : > { %s3392_s30 = scalar_lea.vmem %s325_s23, 2048  ;;  %p3400_p7 = scmp.lt.s32.totalorder %s325_s23, %s325_s23 }
  0x18   : > { %p3393_p0 = scmp.ne.s32.totalorder %s325_s23, %s3392_s30  ;;  %p3401_p8 = scmp.lt.s32.totalorder %s3392_s30, %s3392_s30 }
  0x1a   : > { %p3395_p1 = pnand %p3393_p0, %p3357_p6  ;;  %p3402_p10 = por %p3401_p8, %p3400_p7 }
  0x1c   : > { %p3396_p4 = pneg %p3395_p1 }
  0x1e   : > { %p3403_p9 = pnand %p3402_p10, %p3396_p4 }
  0x20   : > { %3406 = shalt.err (!%p3403_p9)
}
  0x21   : > { %s3427_s12 = smov 64   ;;  %s3428_s13 = smov 4  }
  0x22   : > { %3020 = dma.hbm_to_vmem [thread:$0]  (!%p3508_p5), %s4164_s5, 2048, %s325_s23, [#allocation5], %s3427_s12, %s3427_s12, %s3428_s13  }
  0x23   : > { %363 = sbr.rel (%p3499_p2) target bundleno = 1217 (0x4c1), region = 64 }
  0x28   : > { %3412 = dma.done.wait (%p3021_p3), [#allocation3], 8192  }
  0x29   : > { %3414 = vsyncadd (%p3021_p3), [#allocation3], 4294959104 }
  0x2a   : > { %3416 = dma.done.wait (%p3021_p3), [#allocation5], 2048  }
  0x2b   : > { %3418 = vsyncadd (%p3021_p3), [#allocation5], 4294965248  ;;  %v3039_v0 = vld [vmem:[%s4160_s1 + $0xe4] ss:$16 sps:$4 sm:$0xff]   ;;  %v3043_v2 = vld [vmem:[%s4160_s1 + $0xe0] ss:$16 sps:$4 sm:$0xff]  }
  0x2c   : > { %v3041_v1 = vld [vmem:[%s4160_s1 + $0x2e4] ss:$16 sps:$4 sm:$0xff]   ;;  %1256 = vmatprep.subr.bf16.mxu0 %v3039_v0  ;;  %v3044_v3 = vld [vmem:[%s4160_s1 + $0x2e0] ss:$16 sps:$4 sm:$0xff]   ;;  %p407_p2 = scmp.lt.s32.totalorder %s3495_s20, 1  ;;  %vm2497_vm0 = vcmask 523264  }
  0x2d   : > { %1329 = vmatprep.subr.bf16.mxu1 %v3041_v1  ;;  %v3045_v4 = vld [vmem:[%s4160_s1 + $0xc4] ss:$16 sps:$4 sm:$0xff]   ;;  %1257 = vmatpush1.bf16.msra.mxu0 %v3043_v2  ;;  %v3049_v6 = vld [vmem:[%s4160_s1 + $0xc0] ss:$16 sps:$4 sm:$0xff]   ;;  %vm2575_vm1 = vcmask 261120   ;;  %vm2583_vm2 = vcmask 257024  }
  0x2e   : > { %1330 = vmatpush1.bf16.msra.mxu1 %v3044_v3  ;;  %v3047_v5 = vld [vmem:[%s4160_s1 + $0x2c4] ss:$16 sps:$4 sm:$0xff]   ;;  %1258 = vmatprep.subr.bf16.mxu0 %v3045_v4  ;;  %v3050_v7 = vld [vmem:[%s4160_s1 + $0x2c0] ss:$16 sps:$4 sm:$0xff]   ;;  %s4174_s20 = smov (!%p407_p2, %s3495_s20), 1 }
  0x2f   : > { %1331 = vmatprep.subr.bf16.mxu1 %v3047_v5  ;;  %v3051_v8 = vld [vmem:[%s4160_s1 + $0xa4] ss:$16 sps:$4 sm:$0xff]   ;;  %v3055_v10 = vld [vmem:[%s4160_s1 + $0xa0] ss:$16 sps:$4 sm:$0xff]   ;;  %s2904_s13 = sshll.u32 %s4174_s20, 8  ;;  %s2905_s26 = sshll.u32 %s4174_s20, 6 }
  0x30   : > { %v3053_v9 = vld [vmem:[%s4160_s1 + $0x2a4] ss:$16 sps:$4 sm:$0xff]   ;;  %v3056_v11 = vld [vmem:[%s4160_s1 + $0x2a0] ss:$16 sps:$4 sm:$0xff]   ;;  %s3680_s24 = scalar_lea.vmem %s4159_s0, %s2904_s13  ;;  %s416_s12 = scalar_lea.vmem %s4170_s11, %s2905_s26 }
  0x31   : > { %1259 = vmatpush1.bf16.msra.mxu0 %v3049_v6  ;;  %v3057_v12 = vld [vmem:[%s4160_s1 + $0x84] ss:$16 sps:$4 sm:$0xff]   ;;  %v3061_v14 = vld [vmem:[%s4160_s1 + $0x80] ss:$16 sps:$4 sm:$0xff]   ;;  %v419_v46 = vld [vmem:[%s3680_s24 + $0x8] sm:$0xff] }
  0x32   : > { %1332 = vmatpush1.bf16.msra.mxu1 %v3050_v7  ;;  %1260 = vmatprep.subr.bf16.mxu0 %v3051_v8  ;;  %v3059_v13 = vld [vmem:[%s4160_s1 + $0x284] ss:$16 sps:$4 sm:$0xff]   ;;  %v3062_v15 = vld [vmem:[%s4160_s1 + $0x280] ss:$16 sps:$4 sm:$0xff]   ;;  %v423_v47 = vld [vmem:[%s3680_s24 + $0x28] sm:$0xff] }
  0x33   : > { %1333 = vmatprep.subr.bf16.mxu1 %v3053_v9  ;;  %v3063_v16 = vld [vmem:[%s4160_s1 + $0x64] ss:$16 sps:$4 sm:$0xff]   ;;  %v3067_v18 = vld [vmem:[%s4160_s1 + $0x60] ss:$16 sps:$4 sm:$0xff]   ;;  %v421_v48 = vld [vmem:[%s3680_s24 + $0x18] sm:$0xff]  ;;  %v3701_v53 = vpack.c.bf16 %v423_v47, %v419_v46 }
  0x34   : > { %v3065_v17 = vld [vmem:[%s4160_s1 + $0x264] ss:$16 sps:$4 sm:$0xff]   ;;  %v3068_v19 = vld [vmem:[%s4160_s1 + $0x260] ss:$16 sps:$4 sm:$0xff]   ;;  %v425_v49 = vld [vmem:[%s3680_s24 + $0x38] sm:$0xff] }
  0x35   : > { %1261 = vmatpush1.bf16.msra.mxu0 %v3055_v10  ;;  %v3069_v20 = vld [vmem:[%s4160_s1 + $0x44] ss:$16 sps:$4 sm:$0xff]   ;;  %v3073_v22 = vld [vmem:[%s4160_s1 + $0x40] ss:$16 sps:$4 sm:$0xff]   ;;  %v3703_v54 = vpack.c.bf16 %v425_v49, %v421_v48  ;;  %1288 = vmatprep.mubr.bf16.mxu0 %v3701_v53  ;;  %v3137_v10 = vld [vmem:[%s4160_s1 + $0xec] ss:$16 sps:$4 sm:$0xff]  }
  0x36   : > { %1334 = vmatpush1.bf16.msra.mxu1 %v3056_v11  ;;  %1262 = vmatprep.subr.bf16.mxu0 %v3057_v12  ;;  %v3071_v21 = vld [vmem:[%s4160_s1 + $0x244] ss:$16 sps:$4 sm:$0xff]   ;;  %v3074_v23 = vld [vmem:[%s4160_s1 + $0x240] ss:$16 sps:$4 sm:$0xff]   ;;  %v3140_v11 = vld [vmem:[%s4160_s1 + $0x2ec] ss:$16 sps:$4 sm:$0xff]  }
  0x37   : > { %1335 = vmatprep.subr.bf16.mxu1 %v3059_v13  ;;  %v3075_v24 = vld [vmem:[%s4160_s1 + $0x24] ss:$16 sps:$4 sm:$0xff]   ;;  %v3079_v26 = vld [vmem:[%s4160_s1 + $0x20] ss:$16 sps:$4 sm:$0xff]   ;;  %1361 = vmatprep.mubr.bf16.mxu1 %v3703_v54  ;;  %v3161_v46 = vld [vmem:[%s4160_s1 + $0x6c] ss:$16 sps:$4 sm:$0xff]  }
  0x38   : > { %v3077_v25 = vld [vmem:[%s4160_s1 + $0x224] ss:$16 sps:$4 sm:$0xff]   ;;  %v3080_v27 = vld [vmem:[%s4160_s1 + $0x220] ss:$16 sps:$4 sm:$0xff]   ;;  %v3164_v47 = vld [vmem:[%s4160_s1 + $0x26c] ss:$16 sps:$4 sm:$0xff]  }
  0x39   : > { %1263 = vmatpush1.bf16.msra.mxu0 %v3061_v14  ;;  %v3081_v28 = vld [vmem:[%s4160_s1 + $0x4] ss:$16 sps:$4 sm:$0xff]   ;;  %v3085_v30 = vld [vmem:[%s4160_s1] ss:$16 sps:$4 sm:$0xff]   ;;  %v3135_v14 = vld [vmem:[%s4160_s1 + $0xe8] ss:$16 sps:$4 sm:$0xff]  }
  0x3a   : > { %1336 = vmatpush1.bf16.msra.mxu1 %v3062_v15  ;;  %1264 = vmatprep.subr.bf16.mxu0 %v3063_v16  ;;  %v3083_v29 = vld [vmem:[%s4160_s1 + $0x204] ss:$16 sps:$4 sm:$0xff]   ;;  %v3086_v31 = vld [vmem:[%s4160_s1 + $0x200] ss:$16 sps:$4 sm:$0xff]   ;;  %v3138_v15 = vld [vmem:[%s4160_s1 + $0x2e8] ss:$16 sps:$4 sm:$0xff]  }
  0x3b   : > { %1337 = vmatprep.subr.bf16.mxu1 %v3065_v17  ;;  %v3087_v32 = vld [vmem:[%s4160_s1 + $0x1e4] ss:$16 sps:$4 sm:$0xff]   ;;  %v3091_v34 = vld [vmem:[%s4160_s1 + $0x1e0] ss:$16 sps:$4 sm:$0xff]   ;;  %v3143_v16 = vld [vmem:[%s4160_s1 + $0xcc] ss:$16 sps:$4 sm:$0xff]  }
  0x3c   : > { %v3089_v33 = vld [vmem:[%s4160_s1 + $0x3e4] ss:$16 sps:$4 sm:$0xff]   ;;  %v3092_v35 = vld [vmem:[%s4160_s1 + $0x3e0] ss:$16 sps:$4 sm:$0xff]   ;;  %v427_v17 = vld [vmem:[%s3680_s24 + $0x48] sm:$0xff] }
  0x3d   : > { %1265 = vmatpush1.bf16.msra.mxu0 %v3067_v18  ;;  %v3093_v36 = vld [vmem:[%s4160_s1 + $0x1c4] ss:$16 sps:$4 sm:$0xff]   ;;  %v3097_v38 = vld [vmem:[%s4160_s1 + $0x1c0] ss:$16 sps:$4 sm:$0xff]   ;;  %v431_v18 = vld [vmem:[%s3680_s24 + $0x68] sm:$0xff] }
  0x3e   : > { %1338 = vmatpush1.bf16.msra.mxu1 %v3068_v19  ;;  %1266 = vmatprep.subr.bf16.mxu0 %v3069_v20  ;;  %v3095_v37 = vld [vmem:[%s4160_s1 + $0x3c4] ss:$16 sps:$4 sm:$0xff]   ;;  %v3098_v39 = vld [vmem:[%s4160_s1 + $0x3c0] ss:$16 sps:$4 sm:$0xff]   ;;  %v3146_v19 = vld [vmem:[%s4160_s1 + $0x2cc] ss:$16 sps:$4 sm:$0xff]  }
  0x3f   : > { %1339 = vmatprep.subr.bf16.mxu1 %v3071_v21  ;;  %v3099_v40 = vld [vmem:[%s4160_s1 + $0x1a4] ss:$16 sps:$4 sm:$0xff]   ;;  %v3103_v42 = vld [vmem:[%s4160_s1 + $0x1a0] ss:$16 sps:$4 sm:$0xff]   ;;  %v429_v20 = vld [vmem:[%s3680_s24 + $0x58] sm:$0xff] }
  0x40   : > { %v3101_v41 = vld [vmem:[%s4160_s1 + $0x3a4] ss:$16 sps:$4 sm:$0xff]   ;;  %v3104_v43 = vld [vmem:[%s4160_s1 + $0x3a0] ss:$16 sps:$4 sm:$0xff]   ;;  %v433_v21 = vld [vmem:[%s3680_s24 + $0x78] sm:$0xff] }
  0x41   : > { %1267 = vmatpush1.bf16.msra.mxu0 %v3073_v22  ;;  %v3105_v44 = vld [vmem:[%s4160_s1 + $0x184] ss:$16 sps:$4 sm:$0xff]   ;;  %v3109_v50 = vld [vmem:[%s4160_s1 + $0x180] ss:$16 sps:$4 sm:$0xff]   ;;  %v3141_v22 = vld [vmem:[%s4160_s1 + $0xc8] ss:$16 sps:$4 sm:$0xff]  }
  0x42   : > { %1340 = vmatpush1.bf16.msra.mxu1 %v3074_v23  ;;  %1268 = vmatprep.subr.bf16.mxu0 %v3075_v24  ;;  %v3107_v45 = vld [vmem:[%s4160_s1 + $0x384] ss:$16 sps:$4 sm:$0xff]   ;;  %v3110_v51 = vld [vmem:[%s4160_s1 + $0x380] ss:$16 sps:$4 sm:$0xff]   ;;  %v3144_v23 = vld [vmem:[%s4160_s1 + $0x2c8] ss:$16 sps:$4 sm:$0xff]   ;;  %v3788_v24 = vpack.c.bf16 %v431_v18, %v427_v17 }
  0x43   : > { %1341 = vmatprep.subr.bf16.mxu1 %v3077_v25  ;;  %v3111_v52 = vld [vmem:[%s4160_s1 + $0x164] ss:$16 sps:$4 sm:$0xff]   ;;  %v3115_v56 = vld [vmem:[%s4160_s1 + $0x160] ss:$16 sps:$4 sm:$0xff]   ;;  %v3790_v25 = vpack.c.bf16 %v433_v21, %v429_v20  ;;  %v3182_v17 = vld [vmem:[%s4160_s1 + $0x20c] ss:$16 sps:$4 sm:$0xff]  }
  0x44   : > { %v3113_v55 = vld [vmem:[%s4160_s1 + $0x364] ss:$16 sps:$4 sm:$0xff]   ;;  %v3116_v57 = vld [vmem:[%s4160_s1 + $0x360] ss:$16 sps:$4 sm:$0xff]   ;;  %v3177_v18 = vld [vmem:[%s4160_s1 + $0x8] ss:$16 sps:$4 sm:$0xff]  }
  0x45   : > { %1269 = vmatpush1.bf16.msra.mxu0 %v3079_v26  ;;  %v3117_v58 = vld [vmem:[%s4160_s1 + $0x144] ss:$16 sps:$4 sm:$0xff]   ;;  %v3121_v60 = vld [vmem:[%s4160_s1 + $0x140] ss:$16 sps:$4 sm:$0xff]   ;;  %v3149_v26 = vld [vmem:[%s4160_s1 + $0xac] ss:$16 sps:$4 sm:$0xff]  }
  0x46   : > { %1342 = vmatpush1.bf16.msra.mxu1 %v3080_v27  ;;  %1270 = vmatprep.subr.bf16.mxu0 %v3081_v28  ;;  %v3119_v59 = vld [vmem:[%s4160_s1 + $0x344] ss:$16 sps:$4 sm:$0xff]   ;;  %v3122_v61 = vld [vmem:[%s4160_s1 + $0x340] ss:$16 sps:$4 sm:$0xff]   ;;  %v3152_v27 = vld [vmem:[%s4160_s1 + $0x2ac] ss:$16 sps:$4 sm:$0xff]  }
  0x47   : > { %1343 = vmatprep.subr.bf16.mxu1 %v3083_v29  ;;  %v3123_v62 = vld [vmem:[%s4160_s1 + $0x124] ss:$16 sps:$4 sm:$0xff]   ;;  %v3127_v0 = vld [vmem:[%s4160_s1 + $0x120] ss:$16 sps:$4 sm:$0xff]   ;;  %v3185_v20 = vld [vmem:[%s4160_s1 + $0x1ec] ss:$16 sps:$4 sm:$0xff]  }
  0x48   : > { %v3125_v63 = vld [vmem:[%s4160_s1 + $0x324] ss:$16 sps:$4 sm:$0xff]   ;;  %v3128_v1 = vld [vmem:[%s4160_s1 + $0x320] ss:$16 sps:$4 sm:$0xff]   ;;  %v3188_v21 = vld [vmem:[%s4160_s1 + $0x3ec] ss:$16 sps:$4 sm:$0xff]  }
  0x49   : > { %1271 = vmatpush1.bf16.msra.mxu0 %v3085_v30  ;;  %v3129_v2 = vld [vmem:[%s4160_s1 + $0x104] ss:$16 sps:$4 sm:$0xff]   ;;  %v3133_v4 = vld [vmem:[%s4160_s1 + $0x100] ss:$16 sps:$4 sm:$0xff]  }
  0x4a   : > { %1344 = vmatpush1.bf16.msra.mxu1 %v3086_v31  ;;  %1272 = vmatprep.subr.bf16.mxu0 %v3087_v32  ;;  %v3131_v3 = vld [vmem:[%s4160_s1 + $0x304] ss:$16 sps:$4 sm:$0xff]   ;;  %v3134_v5 = vld [vmem:[%s4160_s1 + $0x300] ss:$16 sps:$4 sm:$0xff]   ;;  %v3147_v32 = vld [vmem:[%s4160_s1 + $0xa8] ss:$16 sps:$4 sm:$0xff]  }
  0x4b   : > { %1345 = vmatprep.subr.bf16.mxu1 %v3089_v33  ;;  %v418_v6 = vld [vmem:[%s3680_s24] sm:$0xff]  ;;  %v420_v8 = vld [vmem:[%s3680_s24 + $0x10] sm:$0xff]  ;;  %v3150_v33 = vld [vmem:[%s4160_s1 + $0x2a8] ss:$16 sps:$4 sm:$0xff]  }
  0x4c   : > { %v422_v7 = vld [vmem:[%s3680_s24 + $0x20] sm:$0xff]  ;;  %v424_v9 = vld [vmem:[%s3680_s24 + $0x30] sm:$0xff] }
  0x4d   : > { %1273 = vmatpush2.bf16.msra.mxu0 %v3091_v34  ;;  %v3762_v12 = vpack.c.bf16 %v422_v7, %v418_v6  ;;  %v3764_v13 = vpack.c.bf16 %v424_v9, %v420_v8  ;;  %v426_v28 = vld [vmem:[%s3680_s24 + $0x40] sm:$0xff]  ;;  %v428_v30 = vld [vmem:[%s3680_s24 + $0x50] sm:$0xff] }
  0x4e   : > { %1346 = vmatpush2.bf16.msra.mxu1 %v3092_v35  ;;  %1274 = vmatprep.subr.bf16.mxu0 %v3093_v36  ;;  %v430_v29 = vld [vmem:[%s3680_s24 + $0x60] sm:$0xff]  ;;  %v432_v31 = vld [vmem:[%s3680_s24 + $0x70] sm:$0xff]  ;;  %v3155_v36 = vld [vmem:[%s4160_s1 + $0x8c] ss:$16 sps:$4 sm:$0xff]  }
  0x4f   : > { %1347 = vmatprep.subr.bf16.mxu1 %v3095_v37  ;;  %v3812_v34 = vpack.c.bf16 %v430_v29, %v426_v28  ;;  %v3814_v35 = vpack.c.bf16 %v432_v31, %v428_v30  ;;  %v435_v37 = vld [vmem:[%s3680_s24 + $0x88] sm:$0xff]  ;;  %v434_v48 = vld [vmem:[%s3680_s24 + $0x80] sm:$0xff]  ;;  %v444_v8 = vld [vmem:[%s3680_s24 + $0xd0] sm:$0xff] }
  0x50   : > { %v438_v49 = vld [vmem:[%s3680_s24 + $0xa0] sm:$0xff]  ;;  %v448_v9 = vld [vmem:[%s3680_s24 + $0xf0] sm:$0xf]  ;;  %v3197_v28 = vld [vmem:[%s4160_s1 + $0x1ac] ss:$16 sps:$4 sm:$0xff]  }
  0x51   : > { %1275 = vmatpush2.bf16.msra.mxu0 %v3097_v38  ;;  %v439_v38 = vld [vmem:[%s3680_s24 + $0xa8] sm:$0xff]  ;;  %v442_v6 = vld [vmem:[%s3680_s24 + $0xc0] sm:$0xff] }
  0x52   : > { %1348 = vmatpush2.bf16.msra.mxu1 %v3098_v39  ;;  %1276 = vmatprep.subr.bf16.mxu0 %v3099_v40  ;;  %v3158_v39 = vld [vmem:[%s4160_s1 + $0x28c] ss:$16 sps:$4 sm:$0xff]   ;;  %v446_v7 = vld [vmem:[%s3680_s24 + $0xe0] sm:$0xf]  ;;  %v3195_v30 = vld [vmem:[%s4160_s1 + $0x1a8] ss:$16 sps:$4 sm:$0xff]  }
  0x53   : > { %1349 = vmatprep.subr.bf16.mxu1 %v3101_v41  ;;  %v437_v40 = vld [vmem:[%s3680_s24 + $0x98] sm:$0xff] }
  0x54   : > { %v441_v41 = vld [vmem:[%s3680_s24 + $0xb8] sm:$0xff] }
  0x55   : > { %1277 = vmatpush2.bf16.msra.mxu0 %v3103_v42  ;;  %v3153_v42 = vld [vmem:[%s4160_s1 + $0x88] ss:$16 sps:$4 sm:$0xff]   ;;  %v3200_v29 = vld [vmem:[%s4160_s1 + $0x3ac] ss:$16 sps:$4 sm:$0xff]  }
  0x56   : > { %1350 = vmatpush2.bf16.msra.mxu1 %v3104_v43  ;;  %1278 = vmatprep.subr.bf16.mxu0 %v3105_v44  ;;  %v3156_v43 = vld [vmem:[%s4160_s1 + $0x288] ss:$16 sps:$4 sm:$0xff]   ;;  %v3832_v44 = vpack.c.bf16 %v439_v38, %v435_v37  ;;  %v3209_v38 = vld [vmem:[%s4160_s1 + $0x16c] ss:$16 sps:$4 sm:$0xff]  }
  0x57   : > { %1351 = vmatprep.subr.bf16.mxu1 %v3107_v45  ;;  %v3834_v45 = vpack.c.bf16 %v441_v41, %v437_v40  ;;  %v3198_v31 = vld [vmem:[%s4160_s1 + $0x3a8] ss:$16 sps:$4 sm:$0xff]  }
  0x58   : > { %v3204_v37 = vld [vmem:[%s4160_s1 + $0x388] ss:$16 sps:$4 sm:$0xff]  }
  0x59   : > { %1279 = vmatpush2.bf16.msra.mxu0 %v3109_v50  ;;  %v436_v50 = vld [vmem:[%s3680_s24 + $0x90] sm:$0xff]  ;;  %v3207_v40 = vld [vmem:[%s4160_s1 + $0x168] ss:$16 sps:$4 sm:$0xff]  }
  0x5a   : > { %1352 = vmatpush2.bf16.msra.mxu1 %v3110_v51  ;;  %1280 = vmatprep.subr.bf16.mxu0 %v3111_v52  ;;  %v440_v51 = vld [vmem:[%s3680_s24 + $0xb0] sm:$0xff]  ;;  %v3159_v52 = vld [vmem:[%s4160_s1 + $0x68] ss:$16 sps:$4 sm:$0xff]  }
  0x5b   : > { %1353 = vmatprep.subr.bf16.mxu1 %v3113_v55  ;;  %v3162_v55 = vld [vmem:[%s4160_s1 + $0x268] ss:$16 sps:$4 sm:$0xff]  }
  0x5c   : > { %v3210_v41 = vld [vmem:[%s4160_s1 + $0x368] ss:$16 sps:$4 sm:$0xff]  }
  0x5d   : > { %1281 = vmatpush2.bf16.msra.mxu0 %v3115_v56  ;;  %v3856_v56 = vpack.c.bf16 %v438_v49, %v434_v48  ;;  %v3221_v48 = vld [vmem:[%s4160_s1 + $0x12c] ss:$16 sps:$4 sm:$0xff]  }
  0x5e   : > { %1354 = vmatpush2.bf16.msra.mxu1 %v3116_v57  ;;  %1282 = vmatprep.subr.bf16.mxu0 %v3117_v58  ;;  %v3858_v57 = vpack.c.bf16 %v440_v51, %v436_v50  ;;  %v3167_v58 = vld [vmem:[%s4160_s1 + $0x4c] ss:$16 sps:$4 sm:$0xff]   ;;  %v3219_v50 = vld [vmem:[%s4160_s1 + $0x128] ss:$16 sps:$4 sm:$0xff]  }
  0x5f   : > { %1355 = vmatprep.subr.bf16.mxu1 %v3119_v59  ;;  %v443_v59 = vld [vmem:[%s3680_s24 + $0xc8] sm:$0xff] }
  0x60   : > { %v3224_v49 = vld [vmem:[%s4160_s1 + $0x32c] ss:$16 sps:$4 sm:$0xff]   ;;  %v3222_v51 = vld [vmem:[%s4160_s1 + $0x328] ss:$16 sps:$4 sm:$0xff]  }
  0x61   : > { %1283 = vmatpush2.bf16.msra.mxu0 %v3121_v60  ;;  %v447_v60 = vld [vmem:[%s3680_s24 + $0xe8] sm:$0xf] }
  0x62   : > { %1356 = vmatpush2.bf16.msra.mxu1 %v3122_v61  ;;  %1284 = vmatprep.subr.bf16.mxu0 %v3123_v62  ;;  %v3170_v61 = vld [vmem:[%s4160_s1 + $0x24c] ss:$16 sps:$4 sm:$0xff]  }
  0x63   : > { %1357 = vmatprep.subr.bf16.mxu1 %v3125_v63  ;;  %v445_v62 = vld [vmem:[%s3680_s24 + $0xd8] sm:$0xff] }
  0x64   : > { %v449_v63 = vld [vmem:[%s3680_s24 + $0xf8] sm:$0xf] }
  0x65   : > { %1285 = vmatpush2.bf16.msra.mxu0 %v3127_v0  ;;  %v3165_v0 = vld [vmem:[%s4160_s1 + $0x48] ss:$16 sps:$4 sm:$0xff]  }
  0x66   : > { %1358 = vmatpush2.bf16.msra.mxu1 %v3128_v1  ;;  %1286 = vmatprep.subr.bf16.mxu0 %v3129_v2  ;;  %v3168_v1 = vld [vmem:[%s4160_s1 + $0x248] ss:$16 sps:$4 sm:$0xff]   ;;  %v3876_v2 = vpack.c.bf16 %v447_v60, %v443_v59  ;;  %v3233_v60 = vld [vmem:[#allocation2 + $0x74] ss:$8 sps:$4 sm:$0xff]  }
  0x67   : > { %1359 = vmatprep.subr.bf16.mxu1 %v3131_v3  ;;  %v3878_v3 = vpack.c.bf16 %v449_v63, %v445_v62  ;;  %v3228_v59 = vld [vmem:[%s4160_s1 + $0x308] ss:$16 sps:$4 sm:$0xff]   ;;  %v3236_v62 = vld [vmem:[#allocation2 + $0x64] ss:$8 sps:$4 sm:$0xff]  }
  0x68   : > { %v3234_v63 = vld [vmem:[#allocation2 + $0x60] ss:$8 sps:$4 sm:$0xff]  }
  0x69   : > { %1287 = vmatpush2.bf16.msra.mxu0 %v3133_v4  ;;  %v3173_v4 = vld [vmem:[%s4160_s1 + $0x2c] ss:$16 sps:$4 sm:$0xff]  }
  0x6a   : > { %1360 = vmatpush2.bf16.msra.mxu1 %v3134_v5  ;;  %1402 = vmatprep.subr.bf16.mxu0 %v3137_v10  ;;  %v3176_v5 = vld [vmem:[%s4160_s1 + $0x22c] ss:$16 sps:$4 sm:$0xff]   ;;  %v3171_v10 = vld [vmem:[%s4160_s1 + $0x28] ss:$16 sps:$4 sm:$0xff]  }
  0x6b   : > { %1475 = vmatprep.subr.bf16.mxu1 %v3140_v11  ;;  %v3174_v11 = vld [vmem:[%s4160_s1 + $0x228] ss:$16 sps:$4 sm:$0xff]  }
  0x6c   : > { %1289 = vmatmul.mubr.bf16.vlgmr.msra.gmra.mxu0 %v3762_v12 }
  0x6d   : > { %1362 = vmatmul.mubr.bf16.vlgmr.msra.gmra.mxu1 %v3764_v13  ;;  %1403 = vmatpush1.bf16.msra.mxu0 %v3135_v14  ;;  %v3900_v14 = vpack.c.bf16 %v446_v7, %v442_v6  ;;  %v3284_v6 = vld [vmem:[#allocation2 + $0x164] ss:$8 sps:$4 sm:$0xff]  }
  0x6e   : > { %1476 = vmatpush1.bf16.msra.mxu1 %v3138_v15  ;;  %1404 = vmatprep.subr.bf16.mxu0 %v3143_v16  ;;  %v3902_v15 = vpack.c.bf16 %v448_v9, %v444_v8  ;;  %v3179_v16 = vld [vmem:[%s4160_s1 + $0xc] ss:$16 sps:$4 sm:$0xff]   ;;  %v3285_v8 = vld [vmem:[#allocation2 + $0x150] ss:$8 sps:$4 sm:$0xff]  }
  0x6f   : > { %1477 = vmatprep.subr.bf16.mxu1 %v3146_v19  ;;  %1298 = vmatprep.mubr.bf16.mxu0 %v3788_v24  ;;  %v3180_v19 = vld [vmem:[%s4160_s1 + $0x208] ss:$16 sps:$4 sm:$0xff]   ;;  %v3248_v7 = vld [vmem:[#allocation2 + $0x24] ss:$8 sps:$4 sm:$0xff]  }
  0x70   : > { %1371 = vmatprep.mubr.bf16.mxu1 %v3790_v25  ;;  %v3290_v9 = vld [vmem:[#allocation2 + $0x144] ss:$8 sps:$4 sm:$0xff]  }
  0x71   : > { %1405 = vmatpush1.bf16.msra.mxu0 %v3141_v22  ;;  %v3183_v22 = vld [vmem:[%s4160_s1 + $0x1e8] ss:$16 sps:$4 sm:$0xff]  }
  0x72   : > { %1478 = vmatpush1.bf16.msra.mxu1 %v3144_v23  ;;  %1406 = vmatprep.subr.bf16.mxu0 %v3149_v26  ;;  %v3186_v23 = vld [vmem:[%s4160_s1 + $0x3e8] ss:$16 sps:$4 sm:$0xff]   ;;  %v3191_v26 = vld [vmem:[%s4160_s1 + $0x1cc] ss:$16 sps:$4 sm:$0xff]  }
  0x73   : > { %1479 = vmatprep.subr.bf16.mxu1 %v3152_v27  ;;  %v3192_v27 = vld [vmem:[%s4160_s1 + $0x3c8] ss:$16 sps:$4 sm:$0xff]  }
  0x74   : > { %1299 = vmatmul.mubr.bf16.gmra.mxu0 %v3812_v34 }
  0x75   : > { %1372 = vmatmul.mubr.bf16.gmra.mxu1 %v3814_v35  ;;  %1407 = vmatpush1.bf16.msra.mxu0 %v3147_v32  ;;  %v3203_v32 = vld [vmem:[%s4160_s1 + $0x18c] ss:$16 sps:$4 sm:$0xff]  }
  0x76   : > { %1480 = vmatpush1.bf16.msra.mxu1 %v3150_v33  ;;  %1408 = vmatprep.subr.bf16.mxu0 %v3155_v36  ;;  %v3206_v33 = vld [vmem:[%s4160_s1 + $0x38c] ss:$16 sps:$4 sm:$0xff]   ;;  %v3201_v36 = vld [vmem:[%s4160_s1 + $0x188] ss:$16 sps:$4 sm:$0xff]  }
  0x77   : > { %1481 = vmatprep.subr.bf16.mxu1 %v3158_v39  ;;  %1308 = vmatprep.mubr.bf16.mxu0 %v3832_v44  ;;  %v3212_v39 = vld [vmem:[%s4160_s1 + $0x36c] ss:$16 sps:$4 sm:$0xff]  }
  0x78   : > { %1381 = vmatprep.mubr.bf16.mxu1 %v3834_v45 }
  0x79   : > { %1409 = vmatpush1.bf16.msra.mxu0 %v3153_v42  ;;  %v3215_v42 = vld [vmem:[%s4160_s1 + $0x14c] ss:$16 sps:$4 sm:$0xff]  }
  0x7a   : > { %1482 = vmatpush1.bf16.msra.mxu1 %v3156_v43  ;;  %1410 = vmatprep.subr.bf16.mxu0 %v3161_v46  ;;  %v3218_v43 = vld [vmem:[%s4160_s1 + $0x34c] ss:$16 sps:$4 sm:$0xff]   ;;  %v3213_v46 = vld [vmem:[%s4160_s1 + $0x148] ss:$16 sps:$4 sm:$0xff]  }
  0x7b   : > { %1483 = vmatprep.subr.bf16.mxu1 %v3164_v47  ;;  %v3216_v47 = vld [vmem:[%s4160_s1 + $0x348] ss:$16 sps:$4 sm:$0xff]  }
  0x7c   : > { %1309 = vmatmul.mubr.bf16.gmra.mxu0 %v3856_v56 }
  0x7d   : > { %1382 = vmatmul.mubr.bf16.gmra.mxu1 %v3858_v57  ;;  %1411 = vmatpush1.bf16.msra.mxu0 %v3159_v52  ;;  %v3227_v52 = vld [vmem:[%s4160_s1 + $0x10c] ss:$16 sps:$4 sm:$0xff]  }
  0x7e   : > { %1484 = vmatpush1.bf16.msra.mxu1 %v3162_v55  ;;  %1412 = vmatprep.subr.bf16.mxu0 %v3167_v58  ;;  %v3230_v55 = vld [vmem:[%s4160_s1 + $0x30c] ss:$16 sps:$4 sm:$0xff]   ;;  %v3225_v58 = vld [vmem:[%s4160_s1 + $0x108] ss:$16 sps:$4 sm:$0xff]  }
  0x7f   : > { %1485 = vmatprep.subr.bf16.mxu1 %v3170_v61  ;;  %1318 = vmatprep.mubr.bf16.mxu0 %v3876_v2  ;;  %v3231_v61 = vld [vmem:[#allocation2 + $0x70] ss:$8 sps:$4 sm:$0xff]  }
  0x80   : > { %1391 = vmatprep.mubr.bf16.mxu1 %v3878_v3 }
  0x81   : > { %1413 = vmatpush1.bf16.msra.mxu0 %v3165_v0  ;;  %v3239_v0 = vld [vmem:[#allocation2 + $0x54] ss:$8 sps:$4 sm:$0xff]  }
  0x82   : > { %1486 = vmatpush1.bf16.msra.mxu1 %v3168_v1  ;;  %1414 = vmatprep.subr.bf16.mxu0 %v3173_v4  ;;  %v3237_v1 = vld [vmem:[#allocation2 + $0x50] ss:$8 sps:$4 sm:$0xff]   ;;  %v3242_v4 = vld [vmem:[#allocation2 + $0x44] ss:$8 sps:$4 sm:$0xff]  }
  0x83   : > { %1487 = vmatprep.subr.bf16.mxu1 %v3176_v5  ;;  %v3240_v5 = vld [vmem:[#allocation2 + $0x40] ss:$8 sps:$4 sm:$0xff]  }
  0x84   : > { %1319 = vmatmul.mubr.bf16.gmra.mxu0 %v3900_v14 }
  0x85   : > { %1392 = vmatmul.mubr.bf16.gmra.mxu1 %v3902_v15  ;;  %1415 = vmatpush1.bf16.msra.mxu0 %v3171_v10  ;;  %v3249_v10 = vld [vmem:[#allocation2 + $0x10] ss:$8 sps:$4 sm:$0xff]  }
  0x86   : > { %1488 = vmatpush1.bf16.msra.mxu1 %v3174_v11  ;;  %1416 = vmatprep.subr.bf16.mxu0 %v3179_v16  ;;  %v3257_v11 = vld [vmem:[#allocation2 + $0xf4] ss:$8 sps:$4 sm:$0xff]   ;;  %v3291_v16 = vld [vmem:[#allocation2 + $0x130] ss:$8 sps:$4 sm:$0xff]  }
  0x87   : > { %1489 = vmatprep.subr.bf16.mxu1 %v3182_v17  ;;  %1434 = vmatprep.mubr.bf16.mxu0 %v3701_v53  ;;  %v3194_v53 = vld [vmem:[%s4160_s1 + $0x3cc] ss:$16 sps:$4 sm:$0xff]  }
  0x88   : > { %1507 = vmatprep.mubr.bf16.mxu1 %v3703_v54  ;;  %v3189_v54 = vld [vmem:[%s4160_s1 + $0x1c8] ss:$16 sps:$4 sm:$0xff]   ;;  %v3296_v17 = vld [vmem:[#allocation2 + $0x124] ss:$8 sps:$4 sm:$0xff]  }
  0x89   : > { %1417 = vmatpush1.bf16.msra.mxu0 %v3177_v18  ;;  %v3255_v18 = vld [vmem:[#allocation2 + $0xf0] ss:$8 sps:$4 sm:$0xff]  }
  0x8a   : > { %1490 = vmatpush1.bf16.msra.mxu1 %v3180_v19  ;;  %1418 = vmatprep.subr.bf16.mxu0 %v3185_v20  ;;  %v3260_v19 = vld [vmem:[#allocation2 + $0xe4] ss:$8 sps:$4 sm:$0xff]   ;;  %v3294_v20 = vld [vmem:[#allocation2 + $0x120] ss:$8 sps:$4 sm:$0xff]  }
  0x8b   : > { %1491 = vmatprep.subr.bf16.mxu1 %v3188_v21  ;;  %v3263_v21 = vld [vmem:[#allocation2 + $0xd4] ss:$8 sps:$4 sm:$0xff]  }
  0x8d   : > { %1419 = vmatpush2.bf16.msra.mxu0 %v3183_v22  ;;  %v3297_v22 = vld [vmem:[#allocation2 + $0x110] ss:$8 sps:$4 sm:$0xff]  }
  0x8e   : > { %1492 = vmatpush2.bf16.msra.mxu1 %v3186_v23  ;;  %1420 = vmatprep.subr.bf16.mxu0 %v3191_v26  ;;  %v3302_v23 = vld [vmem:[#allocation2 + $0x104] ss:$8 sps:$4 sm:$0xff]   ;;  %v3261_v26 = vld [vmem:[#allocation2 + $0xd0] ss:$8 sps:$4 sm:$0xff]  }
  0x8f   : > { %1493 = vmatprep.subr.bf16.mxu1 %v3194_v53  ;;  %v3266_v53 = vld [vmem:[#allocation2 + $0xc4] ss:$8 sps:$4 sm:$0xff]  }
  0x91   : > { %1421 = vmatpush2.bf16.msra.mxu0 %v3189_v54  ;;  %v3300_v54 = vld [vmem:[#allocation2 + $0x100] ss:$8 sps:$4 sm:$0xff]  }
  0x92   : > { %1494 = vmatpush2.bf16.msra.mxu1 %v3192_v27  ;;  %1422 = vmatprep.subr.bf16.mxu0 %v3197_v28  ;;  %v3305_v27 = vld [vmem:[#allocation2 + $0x1f4] ss:$8 sps:$4 sm:$0xff]   ;;  %v3264_v28 = vld [vmem:[#allocation2 + $0xc0] ss:$8 sps:$4 sm:$0xff]  }
  0x93   : > { %1495 = vmatprep.subr.bf16.mxu1 %v3200_v29  ;;  %v3269_v29 = vld [vmem:[#allocation2 + $0xb4] ss:$8 sps:$4 sm:$0xff]  }
  0x95   : > { %1423 = vmatpush2.bf16.msra.mxu0 %v3195_v30  ;;  %v3303_v30 = vld [vmem:[#allocation2 + $0x1f0] ss:$8 sps:$4 sm:$0xff]  }
  0x96   : > { %1496 = vmatpush2.bf16.msra.mxu1 %v3198_v31  ;;  %1424 = vmatprep.subr.bf16.mxu0 %v3203_v32  ;;  %v3308_v31 = vld [vmem:[#allocation2 + $0x1e4] ss:$8 sps:$4 sm:$0xff]   ;;  %v3267_v32 = vld [vmem:[#allocation2 + $0xb0] ss:$8 sps:$4 sm:$0xff]  }
  0x97   : > { %1497 = vmatprep.subr.bf16.mxu1 %v3206_v33  ;;  %v3272_v33 = vld [vmem:[#allocation2 + $0xa4] ss:$8 sps:$4 sm:$0xff]  }
  0x99   : > { %1425 = vmatpush2.bf16.msra.mxu0 %v3201_v36  ;;  %v3306_v36 = vld [vmem:[#allocation2 + $0x1e0] ss:$8 sps:$4 sm:$0xff]  }
  0x9a   : > { %1498 = vmatpush2.bf16.msra.mxu1 %v3204_v37  ;;  %1426 = vmatprep.subr.bf16.mxu0 %v3209_v38  ;;  %v3311_v37 = vld [vmem:[#allocation2 + $0x1d4] ss:$8 sps:$4 sm:$0xff]   ;;  %v3270_v38 = vld [vmem:[#allocation2 + $0xa0] ss:$8 sps:$4 sm:$0xff]  }
  0x9b   : > { %1499 = vmatprep.subr.bf16.mxu1 %v3212_v39  ;;  %v3275_v39 = vld [vmem:[#allocation2 + $0x94] ss:$8 sps:$4 sm:$0xff]  }
  0x9d   : > { %1427 = vmatpush2.bf16.msra.mxu0 %v3207_v40  ;;  %v3309_v40 = vld [vmem:[#allocation2 + $0x1d0] ss:$8 sps:$4 sm:$0xff]  }
  0x9e   : > { %1500 = vmatpush2.bf16.msra.mxu1 %v3210_v41  ;;  %1428 = vmatprep.subr.bf16.mxu0 %v3215_v42  ;;  %v3314_v41 = vld [vmem:[#allocation2 + $0x1c4] ss:$8 sps:$4 sm:$0xff]   ;;  %v3273_v42 = vld [vmem:[#allocation2 + $0x90] ss:$8 sps:$4 sm:$0xff]  }
  0x9f   : > { %1501 = vmatprep.subr.bf16.mxu1 %v3218_v43  ;;  %v3278_v43 = vld [vmem:[#allocation2 + $0x84] ss:$8 sps:$4 sm:$0xff]  }
  0xa1   : > { %1429 = vmatpush2.bf16.msra.mxu0 %v3213_v46  ;;  %v3312_v46 = vld [vmem:[#allocation2 + $0x1c0] ss:$8 sps:$4 sm:$0xff]  }
  0xa2   : > { %1502 = vmatpush2.bf16.msra.mxu1 %v3216_v47  ;;  %1430 = vmatprep.subr.bf16.mxu0 %v3221_v48  ;;  %v3317_v47 = vld [vmem:[#allocation2 + $0x1b4] ss:$8 sps:$4 sm:$0xff]   ;;  %v3276_v48 = vld [vmem:[#allocation2 + $0x80] ss:$8 sps:$4 sm:$0xff]  }
  0xa3   : > { %1503 = vmatprep.subr.bf16.mxu1 %v3224_v49  ;;  %v3315_v49 = vld [vmem:[#allocation2 + $0x1b0] ss:$8 sps:$4 sm:$0xff]  }
  0xa5   : > { %1431 = vmatpush2.bf16.msra.mxu0 %v3219_v50  ;;  %v3320_v50 = vld [vmem:[#allocation2 + $0x1a4] ss:$8 sps:$4 sm:$0xff]  }
  0xa6   : > { %1504 = vmatpush2.bf16.msra.mxu1 %v3222_v51  ;;  %1432 = vmatprep.subr.bf16.mxu0 %v3227_v52  ;;  %v3318_v51 = vld [vmem:[#allocation2 + $0x1a0] ss:$8 sps:$4 sm:$0xff]   ;;  %v3323_v52 = vld [vmem:[#allocation2 + $0x194] ss:$8 sps:$4 sm:$0xff]  }
  0xa7   : > { %1505 = vmatprep.subr.bf16.mxu1 %v3230_v55  ;;  %v3321_v55 = vld [vmem:[#allocation2 + $0x190] ss:$8 sps:$4 sm:$0xff]  }
  0xa9   : > { %1433 = vmatpush2.bf16.msra.mxu0 %v3225_v58  ;;  %v3326_v58 = vld [vmem:[#allocation2 + $0x184] ss:$8 sps:$4 sm:$0xff]  }
  0xaa   : > { %1506 = vmatpush2.bf16.msra.mxu1 %v3228_v59  ;;  %1960 = vmatprep.subr.bf16.mxu0 %v3233_v60  ;;  %v3324_v59 = vld [vmem:[#allocation2 + $0x180] ss:$8 sps:$4 sm:$0xff]   ;;  %v596_v60 = vlaneseq }
  0xac   : > { %1435 = vmatmul.mubr.bf16.vlgmr.msra.gmra.mxu0 %v3762_v12  ;;  %v3245_v12 = vld [vmem:[#allocation2 + $0x34] ss:$8 sps:$4 sm:$0xff]  }
  0xad   : > { %1508 = vmatmul.mubr.bf16.vlgmr.msra.gmra.mxu1 %v3764_v13  ;;  %1444 = vmatprep.mubr.bf16.mxu0 %v3788_v24  ;;  %v3281_v13 = vld [vmem:[#allocation2 + $0x174] ss:$8 sps:$4 sm:$0xff]   ;;  %v3279_v24 = vld [vmem:[#allocation2 + $0x170] ss:$8 sps:$4 sm:$0xff]  }
  0xae   : > { %1517 = vmatprep.mubr.bf16.mxu1 %v3790_v25  ;;  %1961 = vmatpush1.bf16.msra.mxu0 %v3231_v61  ;;  %v3243_v25 = vld [vmem:[#allocation2 + $0x30] ss:$8 sps:$4 sm:$0xff]   ;;  %v4030_v61 = vshrl.u32 %v596_v60, 7 }
  0xaf   : > { %1962 = vmatprep.subr.bf16.mxu0 %v3236_v62  ;;  %2033 = vmatprep.subr.bf16.mxu1 %v3281_v13 }
  0xb0   : > { %2034 = vmatpush1.bf16.msra.mxu1 %v3279_v24  ;;  %v602_v62 = vsub.s32 1, %v4030_v61 }
  0xb1   : > { %2035 = vmatprep.subr.bf16.mxu1 %v3284_v6 }
  0xb2   : > { %1963 = vmatpush1.bf16.msra.mxu0 %v3234_v63  ;;  %v4036_v63 = vld [vmem:[%s4161_s2] sm:$0xf] }
  0xb3   : > { %1964 = vmatprep.subr.bf16.mxu0 %v3239_v0  ;;  %v598_v0 = vsub.s32 0, %v4030_v61 }
  0xb4   : > { %1445 = vmatmul.mubr.bf16.gmra.mxu0 %v3812_v34  ;;  %v3282_v34 = vld [vmem:[#allocation2 + $0x160] ss:$8 sps:$4 sm:$0xff]  }
  0xb5   : > { %1518 = vmatmul.mubr.bf16.gmra.mxu1 %v3814_v35  ;;  %1454 = vmatprep.mubr.bf16.mxu0 %v3832_v44  ;;  %v3287_v35 = vld [vmem:[#allocation2 + $0x154] ss:$8 sps:$4 sm:$0xff]   ;;  %v3246_v44 = vld [vmem:[#allocation2 + $0x20] ss:$8 sps:$4 sm:$0xff]  }
  0xb6   : > { %1527 = vmatprep.mubr.bf16.mxu1 %v3834_v45  ;;  %1965 = vmatpush1.bf16.msra.mxu0 %v3237_v1  ;;  %v3251_v45 = vld [vmem:[#allocation2 + $0x14] ss:$8 sps:$4 sm:$0xff]  }
  0xb7   : > { %1966 = vmatprep.subr.bf16.mxu0 %v3242_v4  ;;  %2036 = vmatpush1.bf16.msra.mxu1 %v3282_v34 }
  0xb8   : > { %2037 = vmatprep.subr.bf16.mxu1 %v3287_v35 }
  0xba   : > { %1967 = vmatpush1.bf16.msra.mxu0 %v3240_v5  ;;  %v4042_v5 = vrot.slane %v4036_v63, %v602_v62 }
  0xbb   : > { %1968 = vmatprep.subr.bf16.mxu0 %v3245_v12  ;;  %2038 = vmatpush1.bf16.msra.mxu1 %v3285_v8  ;;  %v4047_v12 = vrot.slane %v4036_v63, %v598_v0 }
  0xbc   : > { %1455 = vmatmul.mubr.bf16.gmra.mxu0 %v3856_v56  ;;  %v3254_v56 = vld [vmem:[#allocation2 + $0x4] ss:$8 sps:$4 sm:$0xff]   ;;  %2039 = vmatprep.subr.bf16.mxu1 %v3290_v9 }
  0xbd   : > { %1528 = vmatmul.mubr.bf16.gmra.mxu1 %v3858_v57  ;;  %1464 = vmatprep.mubr.bf16.mxu0 %v3876_v2  ;;  %v3288_v57 = vld [vmem:[#allocation2 + $0x140] ss:$8 sps:$4 sm:$0xff]   ;;  %v3293_v2 = vld [vmem:[#allocation2 + $0x134] ss:$8 sps:$4 sm:$0xff]  }
  0xbe   : > { %1537 = vmatprep.mubr.bf16.mxu1 %v3878_v3  ;;  %1969 = vmatpush1.bf16.msra.mxu0 %v3243_v25  ;;  %v3252_v3 = vld [vmem:[#allocation2] ss:$8 sps:$4 sm:$0xff]  }
  0xbf   : > { %1970 = vmatprep.subr.bf16.mxu0 %v3248_v7  ;;  %2040 = vmatpush1.bf16.msra.mxu1 %v3288_v57 }
  0xc0   : > { %2041 = vmatprep.subr.bf16.mxu1 %v3293_v2 }
  0xc2   : > { %1971 = vmatpush1.bf16.msra.mxu0 %v3246_v44 }
  0xc3   : > { %1972 = vmatprep.subr.bf16.mxu0 %v3251_v45  ;;  %2042 = vmatpush1.bf16.msra.mxu1 %v3291_v16 }
  0xc4   : > { %1465 = vmatmul.mubr.bf16.gmra.mxu0 %v3900_v14  ;;  %2043 = vmatprep.subr.bf16.mxu1 %v3296_v17  ;;  %v3299_v14 = vld [vmem:[#allocation2 + $0x114] ss:$8 sps:$4 sm:$0xff]  }
  0xc5   : > { %1538 = vmatmul.mubr.bf16.gmra.mxu1 %v3902_v15  ;;  %v3258_v15 = vld [vmem:[#allocation2 + $0xe0] ss:$8 sps:$4 sm:$0xff]  }
  0xc6   : > { %1973 = vmatpush1.bf16.msra.mxu0 %v3249_v10 }
  0xc7   : > { %1974 = vmatprep.subr.bf16.mxu0 %v3254_v56  ;;  %2044 = vmatpush1.bf16.msra.mxu1 %v3294_v20 }
  0xc8   : > { %2045 = vmatprep.subr.bf16.mxu1 %v3299_v14 }
  0xca   : > { %1975 = vmatpush1.bf16.msra.mxu0 %v3252_v3 }
  0xcb   : > { %1976 = vmatprep.subr.bf16.mxu0 %v3257_v11  ;;  %2046 = vmatpush1.bf16.msra.mxu1 %v3297_v22 }
  0xcc   : > { %2047 = vmatprep.subr.bf16.mxu1 %v3302_v23 }
  0xce   : > { %1977 = vmatpush2.bf16.msra.mxu0 %v3255_v18 }
  0xcf   : > { %1978 = vmatprep.subr.bf16.mxu0 %v3260_v19  ;;  %2048 = vmatpush1.bf16.msra.mxu1 %v3300_v54 }
  0xd0   : > { %2049 = vmatprep.subr.bf16.mxu1 %v3305_v27 }
  0xd2   : > { %1979 = vmatpush2.bf16.msra.mxu0 %v3258_v15 }
  0xd3   : > { %1980 = vmatprep.subr.bf16.mxu0 %v3263_v21  ;;  %2050 = vmatpush2.bf16.msra.mxu1 %v3303_v30 }
  0xd4   : > { %2051 = vmatprep.subr.bf16.mxu1 %v3308_v31 }
  0xd6   : > { %1981 = vmatpush2.bf16.msra.mxu0 %v3261_v26 }
  0xd7   : > { %1982 = vmatprep.subr.bf16.mxu0 %v3266_v53  ;;  %2052 = vmatpush2.bf16.msra.mxu1 %v3306_v36 }
  0xd8   : > { %2053 = vmatprep.subr.bf16.mxu1 %v3311_v37 }
  0xda   : > { %1983 = vmatpush2.bf16.msra.mxu0 %v3264_v28 }
  0xdb   : > { %1984 = vmatprep.subr.bf16.mxu0 %v3269_v29  ;;  %2054 = vmatpush2.bf16.msra.mxu1 %v3309_v40 }
  0xdc   : > { %2055 = vmatprep.subr.bf16.mxu1 %v3314_v41 }
  0xde   : > { %1985 = vmatpush2.bf16.msra.mxu0 %v3267_v32 }
  0xdf   : > { %1986 = vmatprep.subr.bf16.mxu0 %v3272_v33  ;;  %2056 = vmatpush2.bf16.msra.mxu1 %v3312_v46 }
  0xe0   : > { %2057 = vmatprep.subr.bf16.mxu1 %v3317_v47 }
  0xe2   : > { %1987 = vmatpush2.bf16.msra.mxu0 %v3270_v38 }
  0xe3   : > { %1988 = vmatprep.subr.bf16.mxu0 %v3275_v39  ;;  %2058 = vmatpush2.bf16.msra.mxu1 %v3315_v49 }
  0xe4   : > { %2059 = vmatprep.subr.bf16.mxu1 %v3320_v50 }
  0xe6   : > { %1989 = vmatpush2.bf16.msra.mxu0 %v3273_v42 }
  0xe7   : > { %1990 = vmatprep.subr.bf16.mxu0 %v3278_v43  ;;  %2060 = vmatpush2.bf16.msra.mxu1 %v3318_v51 }
  0xe8   : > { %2061 = vmatprep.subr.bf16.mxu1 %v3323_v52 }
  0xea   : > { %1991 = vmatpush2.bf16.msra.mxu0 %v3276_v48 }
  0xeb   : > { %2062 = vmatpush2.bf16.msra.mxu1 %v3321_v55 }
  0xec   : > { %2063 = vmatprep.subr.bf16.mxu1 %v3326_v58 }
  0xef   : > { %2064 = vmatpush2.bf16.msra.mxu1 %v3324_v59 }
 0x12c   : > { %v1290_v1 = vpop.f32.mrf.mxu0 }
 0x12d   : > { %v1363_v4 = vpop.f32.mrf.mxu1  ;;  %v1291_v35 = vadd.f32 %v1290_v1, %v4047_v12 }
 0x12e   : > { %v1292_v13 = vpop.f32.mrf.mxu0 }
 0x12f   : > { %v1365_v24 = vpop.f32.mrf.mxu1  ;;  %v1293_v7 = vadd.f32 %v1292_v13, %v4042_v5  ;;  %v1364_v3 = vadd.f32 %v1363_v4, %v1291_v35 }
 0x130   : > { %v1294_v25 = vpop.f32.mrf.mxu0 }
 0x131   : > { %v1367_v6 = vpop.f32.mrf.mxu1  ;;  %v1295_v34 = vadd.f32 %v1294_v25, %v4047_v12  ;;  %v1366_v57 = vadd.f32 %v1365_v24, %v1293_v7 }
 0x132   : > { %v1296_v44 = vpop.f32.mrf.mxu0 }
 0x133   : > { %v1369_v45 = vpop.f32.mrf.mxu1  ;;  %v1297_v8 = vadd.f32 %v1296_v44, %v4042_v5  ;;  %v1368_v9 = vadd.f32 %v1367_v6, %v1295_v34 }
 0x134   : > { %v1300_v10 = vpop.f32.mrf.mxu0 }
 0x135   : > { %v1373_v56 = vpop.f32.mrf.mxu1  ;;  %v1370_v2 = vadd.f32 %v1369_v45, %v1297_v8  ;;  %v1301_v11 = vadd.f32 %v1300_v10, %v4047_v12  ;;  %v1613_v20 = vpack.c.bf16 %v1368_v9, %v1364_v3 }
 0x136   : > { %v1302_v16 = vpop.f32.mrf.mxu0 }
 0x137   : > { %v1375_v17 = vpop.f32.mrf.mxu1  ;;  %v1614_v18 = vpack.c.bf16 %v1370_v2, %v1366_v57  ;;  %v1303_v19 = vadd.f32 %v1302_v16, %v4042_v5  ;;  %v1374_v22 = vadd.f32 %v1373_v56, %v1301_v11  ;;  %v610_v56 = vsub.s32 3, %v4030_v61 }
 0x138   : > { %v1304_v14 = vpop.f32.mrf.mxu0  ;;  %v606_v57 = vsub.s32 2, %v4030_v61 }
 0x139   : > { %v1377_v15 = vpop.f32.mrf.mxu1  ;;  %1992 = vmatprep.mubr.bf16.mxu0 %v1614_v18  ;;  %v1305_v21 = vadd.f32 %v1304_v14, %v4047_v12  ;;  %v1376_v53 = vadd.f32 %v1375_v17, %v1303_v19  ;;  %v4068_v3 = vrot.slane %v4036_v63, %v610_v56 }
 0x13a   : > { %1993 = vmatmul.mubr.bf16.vlgmr.msra.gmra.mxu0 %v1613_v20  ;;  %v1306_v23 = vpop.f32.mrf.mxu0  ;;  %v4071_v11 = vrot.slane %v4036_v63, %v606_v57 }
 0x13b   : > { %v1379_v26 = vpop.f32.mrf.mxu1  ;;  %v1307_v54 = vadd.f32 %v1306_v23, %v4042_v5  ;;  %v1378_v27 = vadd.f32 %v1377_v15, %v1305_v21 }
 0x13c   : > { %v1310_v28 = vpop.f32.mrf.mxu0 }
 0x13d   : > { %v1383_v29 = vpop.f32.mrf.mxu1  ;;  %v1380_v30 = vadd.f32 %v1379_v26, %v1307_v54  ;;  %v1617_v31 = vpack.c.bf16 %v1378_v27, %v1374_v22  ;;  %v1311_v32 = vadd.f32 %v1310_v28, %v4047_v12 }
 0x13e   : > { %v1312_v33 = vpop.f32.mrf.mxu0 }
 0x13f   : > { %v1385_v36 = vpop.f32.mrf.mxu1  ;;  %v1618_v37 = vpack.c.bf16 %v1380_v30, %v1376_v53  ;;  %v1313_v38 = vadd.f32 %v1312_v33, %v4042_v5  ;;  %v1384_v42 = vadd.f32 %v1383_v29, %v1311_v32 }
 0x140   : > { %v1314_v39 = vpop.f32.mrf.mxu0 }
 0x141   : > { %v1387_v40 = vpop.f32.mrf.mxu1  ;;  %v1315_v41 = vadd.f32 %v1314_v39, %v4047_v12  ;;  %2002 = vmatprep.mubr.bf16.mxu0 %v1618_v37  ;;  %v1386_v47 = vadd.f32 %v1385_v36, %v1313_v38 }
 0x142   : > { %v1316_v43 = vpop.f32.mrf.mxu0  ;;  %2003 = vmatmul.mubr.bf16.gmra.mxu0 %v1617_v31 }
 0x143   : > { %v1389_v46 = vpop.f32.mrf.mxu1  ;;  %v1317_v48 = vadd.f32 %v1316_v43, %v4042_v5  ;;  %v1388_v49 = vadd.f32 %v1387_v40, %v1315_v41 }
 0x144   : > { %v1320_v50 = vpop.f32.mrf.mxu0 }
 0x145   : > { %v1393_v51 = vpop.f32.mrf.mxu1  ;;  %v1390_v52 = vadd.f32 %v1389_v46, %v1317_v48  ;;  %v1621_v55 = vpack.c.bf16 %v1388_v49, %v1384_v42  ;;  %v1321_v58 = vadd.f32 %v1320_v50, %v4047_v12 }
 0x146   : > { %v1322_v59 = vpop.f32.mrf.mxu0 }
 0x147   : > { %v1395_v60 = vpop.f32.mrf.mxu1  ;;  %v1622_v1 = vpack.c.bf16 %v1390_v52, %v1386_v47  ;;  %v1323_v4 = vadd.f32 %v1322_v59, %v4042_v5  ;;  %v1394_v6 = vadd.f32 %v1393_v51, %v1321_v58 }
 0x148   : > { %v1324_v13 = vpop.f32.mrf.mxu0 }
 0x149   : > { %v1397_v24 = vpop.f32.mrf.mxu1  ;;  %v1325_v25 = vadd.f32 %v1324_v13, %v4047_v12  ;;  %2012 = vmatprep.mubr.bf16.mxu0 %v1622_v1  ;;  %v1396_v35 = vadd.f32 %v1395_v60, %v1323_v4 }
 0x14a   : > { %v1326_v7 = vpop.f32.mrf.mxu0  ;;  %2013 = vmatmul.mubr.bf16.gmra.mxu0 %v1621_v55 }
 0x14b   : > { %v1399_v34 = vpop.f32.mrf.mxu1  ;;  %v1327_v44 = vadd.f32 %v1326_v7, %v4042_v5  ;;  %v1398_v45 = vadd.f32 %v1397_v24, %v1325_v25 }
 0x14d   : > { %v1400_v8 = vadd.f32 %v1399_v34, %v1327_v44  ;;  %v1625_v9 = vpack.c.bf16 %v1398_v45, %v1394_v6 }
 0x14f   : > { %v1626_v10 = vpack.c.bf16 %v1400_v8, %v1396_v35 }
 0x151   : > { %2022 = vmatprep.mubr.bf16.mxu0 %v1626_v10 }
 0x152   : > { %2023 = vmatmul.mubr.bf16.gmra.mxu0 %v1625_v9 }
 0x16c   : > { %v1436_v2 = vpop.f32.mrf.mxu0 }
 0x16d   : > { %v1509_v12 = vpop.f32.mrf.mxu1  ;;  %v1437_v14 = vadd.f32 %v1436_v2, %v4071_v11 }
 0x16e   : > { %v1438_v16 = vpop.f32.mrf.mxu0 }
 0x16f   : > { %v1511_v5 = vpop.f32.mrf.mxu1  ;;  %v1439_v19 = vadd.f32 %v1438_v16, %v4068_v3  ;;  %v1510_v27 = vadd.f32 %v1509_v12, %v1437_v14 }
 0x170   : > { %v1440_v17 = vpop.f32.mrf.mxu0 }
 0x171   : > { %v1513_v18 = vpop.f32.mrf.mxu1  ;;  %v1441_v20 = vadd.f32 %v1440_v17, %v4071_v11  ;;  %v1512_v54 = vadd.f32 %v1511_v5, %v1439_v19 }
 0x172   : > { %v1442_v15 = vpop.f32.mrf.mxu0 }
 0x173   : > { %v1515_v21 = vpop.f32.mrf.mxu1  ;;  %v1443_v22 = vadd.f32 %v1442_v15, %v4068_v3  ;;  %v1514_v23 = vadd.f32 %v1513_v18, %v1441_v20 }
 0x174   : > { %v1446_v26 = vpop.f32.mrf.mxu0 }
 0x175   : > { %v1519_v53 = vpop.f32.mrf.mxu1  ;;  %v1516_v63 = vadd.f32 %v1515_v21, %v1443_v22  ;;  %v1615_v31 = vpack.c.bf16 %v1514_v23, %v1510_v27  ;;  %v1447_v38 = vadd.f32 %v1446_v26, %v4071_v11  ;;  %v3327_v26 = vld [vmem:[#allocation4 + $0x78] sm:$0xff]   ;;  %v3332_v27 = vld [vmem:[#allocation4 + $0x28] sm:$0xff]  }
 0x176   : > { %v1448_v28 = vpop.f32.mrf.mxu0  ;;  %2906 = vmatprep.subr.bf16.mxu0 %v3327_v26 }
 0x177   : > { %v1521_v29 = vpop.f32.mrf.mxu1  ;;  %v1616_v30 = vpack.c.bf16 %v1516_v63, %v1512_v54  ;;  %v1449_v36 = vadd.f32 %v1448_v28, %v4068_v3  ;;  %v1520_v49 = vadd.f32 %v1519_v53, %v1447_v38  ;;  %v3328_v53 = vld [vmem:[#allocation4 + $0x38] sm:$0xff]   ;;  %v3329_v54 = vld [vmem:[#allocation4 + $0x70] sm:$0xff]   ;;  %v3334_v28 = vld [vmem:[#allocation4 + $0x20] sm:$0xff]  }
 0x178   : > { %v1450_v32 = vpop.f32.mrf.mxu0  ;;  %2907 = vmatpush3.bf16.msra.mxu0 %v3328_v53  ;;  %v3330_v63 = vld [vmem:[#allocation4 + $0x30] sm:$0xff]   ;;  %v3342_v38 = vld [vmem:[#allocation4] sm:$0xff]  }
 0x179   : > { %v1523_v33 = vpop.f32.mrf.mxu1  ;;  %v1451_v37 = vadd.f32 %v1450_v32, %v4071_v11  ;;  %2065 = vmatprep.mubr.bf16.mxu1 %v1616_v30  ;;  %v1522_v47 = vadd.f32 %v1521_v29, %v1449_v36  ;;  %2908 = vmatprep.subr.bf16.mxu0 %v3329_v54  ;;  %v3335_v29 = vld [vmem:[#allocation4 + $0x58] sm:$0xff]   ;;  %v3338_v32 = vld [vmem:[#allocation4 + $0x10] sm:$0xff]   ;;  %v3340_v36 = vld [vmem:[#allocation4 + $0x8] sm:$0xff]  }
 0x17a   : > { %v1452_v39 = vpop.f32.mrf.mxu0  ;;  %2066 = vmatmul.mubr.bf16.vlgmr.msra.gmra.mxu1 %v1615_v31  ;;  %v3336_v30 = vld [vmem:[#allocation4 + $0x18] sm:$0xff]   ;;  %v3337_v31 = vld [vmem:[#allocation4 + $0x50] sm:$0xff]  }
 0x17b   : > { %v1525_v40 = vpop.f32.mrf.mxu1  ;;  %v1453_v41 = vadd.f32 %v1452_v39, %v4068_v3  ;;  %v1524_v42 = vadd.f32 %v1523_v33, %v1451_v37  ;;  %v3339_v33 = vld [vmem:[#allocation4 + $0x48] sm:$0xff]   ;;  %v3341_v37 = vld [vmem:[#allocation4 + $0x40] sm:$0xff]   ;;  %v3343_v39 = vld [vmem:[%s4166_s7 + $0x38] sm:$0xff]  }
 0x17c   : > { %v1456_v43 = vpop.f32.mrf.mxu0  ;;  %2909 = vmatpush3.bf16.msra.mxu0 %v3330_v63  ;;  %2966 = vmatprep.subr.bf16.mxu1 %v3343_v39 }
 0x17d   : > { %v1529_v46 = vpop.f32.mrf.mxu1  ;;  %v1526_v48 = vadd.f32 %v1525_v40, %v1453_v41  ;;  %v1619_v55 = vpack.c.bf16 %v1524_v42, %v1520_v49  ;;  %v1457_v4 = vadd.f32 %v1456_v43, %v4071_v11  ;;  %v3344_v40 = vld [vmem:[%s4166_s7 + $0x30] sm:$0xff]   ;;  %2967 = vmatpush3.bf16.msra.mxu1 %v3343_v39  ;;  %v3345_v41 = vld [vmem:[%s4166_s7 + $0x28] sm:$0xff]  }
 0x17e   : > { %v1458_v50 = vpop.f32.mrf.mxu0  ;;  %2968 = vmatprep.subr.bf16.mxu1 %v3344_v40 }
 0x17f   : > { %v1531_v51 = vpop.f32.mrf.mxu1  ;;  %v1620_v52 = vpack.c.bf16 %v1526_v48, %v1522_v47  ;;  %v1459_v60 = vadd.f32 %v1458_v50, %v4068_v3  ;;  %v1530_v45 = vadd.f32 %v1529_v46, %v1457_v4 }
 0x180   : > { %v1460_v58 = vpop.f32.mrf.mxu0 }
 0x181   : > { %v1533_v59 = vpop.f32.mrf.mxu1  ;;  %v1461_v1 = vadd.f32 %v1460_v58, %v4071_v11  ;;  %2075 = vmatprep.mubr.bf16.mxu1 %v1620_v52  ;;  %v1532_v35 = vadd.f32 %v1531_v51, %v1459_v60  ;;  %2969 = vmatpush3.bf16.msra.mxu1 %v3344_v40 }
 0x182   : > { %v1462_v13 = vpop.f32.mrf.mxu0  ;;  %2076 = vmatmul.mubr.bf16.gmra.mxu1 %v1619_v55  ;;  %2970 = vmatprep.subr.bf16.mxu1 %v3345_v41  ;;  %v1612_v55 = vld [vmem:[%s4163_s4] sm:$0x3] }
 0x183   : > { %v1535_v24 = vpop.f32.mrf.mxu1  ;;  %v1463_v25 = vadd.f32 %v1462_v13, %v4068_v3  ;;  %v1534_v6 = vadd.f32 %v1533_v59, %v1461_v1  ;;  %v1637_v59 = vrot.slane %v1612_v55, %v602_v62  ;;  %v1633_v60 = vrot.slane %v1612_v55, %v598_v0 }
 0x184   : > { %v1466_v7 = vpop.f32.mrf.mxu0 }
 0x185   : > { %v1539_v34 = vpop.f32.mrf.mxu1  ;;  %v1536_v44 = vadd.f32 %v1535_v24, %v1463_v25  ;;  %v1623_v56 = vpack.c.bf16 %v1534_v6, %v1530_v45  ;;  %v1467_v5 = vadd.f32 %v1466_v7, %v4071_v11  ;;  %2971 = vmatpush3.bf16.msra.mxu1 %v3345_v41 }
 0x186   : > { %v1468_v8 = vpop.f32.mrf.mxu0 }
 0x187   : > { %v1541_v9 = vpop.f32.mrf.mxu1  ;;  %v1624_v10 = vpack.c.bf16 %v1536_v44, %v1532_v35  ;;  %v1469_v12 = vadd.f32 %v1468_v8, %v4068_v3  ;;  %v1540_v21 = vadd.f32 %v1539_v34, %v1467_v5 }
 0x188   : > { %v1470_v57 = vpop.f32.mrf.mxu0 }
 0x189   : > { %v1543_v2 = vpop.f32.mrf.mxu1  ;;  %v1471_v16 = vadd.f32 %v1470_v57, %v4071_v11  ;;  %2085 = vmatprep.mubr.bf16.mxu1 %v1624_v10  ;;  %v1542_v14 = vadd.f32 %v1541_v9, %v1469_v12  ;;  %v3331_v11 = vld [vmem:[#allocation4 + $0x68] sm:$0xff]  }
 0x18a   : > { %v1472_v17 = vpop.f32.mrf.mxu0  ;;  %2086 = vmatmul.mubr.bf16.gmra.mxu1 %v1623_v56  ;;  %2910 = vmatprep.subr.bf16.mxu0 %v3331_v11 }
 0x18b   : > { %v1473_v18 = vadd.f32 %v1472_v17, %v4068_v3  ;;  %v1544_v19 = vadd.f32 %v1543_v2, %v1471_v16  ;;  %v1545_v20 = vpop.f32.mrf.mxu1  ;;  %v3333_v3 = vld [vmem:[#allocation4 + $0x60] sm:$0xff]   ;;  %2911 = vmatpush3.bf16.msra.mxu0 %v3332_v27 }
 0x18c   : > { %2912 = vmatprep.subr.bf16.mxu0 %v3333_v3 }
 0x18d   : > { %v1546_v15 = vadd.f32 %v1545_v20, %v1473_v18  ;;  %v1627_v23 = vpack.c.bf16 %v1544_v19, %v1540_v21 }
 0x18f   : > { %v1628_v22 = vpack.c.bf16 %v1546_v15, %v1542_v14  ;;  %2913 = vmatpush3.bf16.msra.mxu0 %v3334_v28 }
 0x190   : > { %2914 = vmatprep.subr.bf16.mxu0 %v3335_v29 }
 0x191   : > { %2095 = vmatprep.mubr.bf16.mxu1 %v1628_v22 }
 0x192   : > { %2096 = vmatmul.mubr.bf16.gmra.mxu1 %v1627_v23 }
 0x193   : > { %2915 = vmatpush3.bf16.msra.mxu0 %v3336_v30 }
 0x194   : > { %2916 = vmatprep.subr.bf16.mxu0 %v3337_v31 }
 0x197   : > { %2917 = vmatpush3.bf16.msra.mxu0 %v3338_v32 }
 0x198   : > { %2918 = vmatprep.subr.bf16.mxu0 %v3339_v33 }
 0x19b   : > { %2919 = vmatpush3.bf16.msra.mxu0 %v3340_v36 }
 0x19c   : > { %2920 = vmatprep.subr.bf16.mxu0 %v3341_v37 }
 0x19f   : > { %2921 = vmatpush3.bf16.msra.mxu0 %v3342_v38 }
 0x1fa   : > { %v1994_v42 = vpop.f32.mrf.mxu0 }
 0x1fb   : > { %v1995_v7 = vadd.f32 %v1994_v42, %v1633_v60 }
 0x1fc   : > { %v1996_v43 = vpop.f32.mrf.mxu0 }
 0x1fd   : > { %v1997_v25 = vadd.f32 %v1996_v43, %v1637_v59 }
 0x1fe   : > { %v1998_v46 = vpop.f32.mrf.mxu0 }
 0x1ff   : > { %v1999_v13 = vadd.f32 %v1998_v46, %v1633_v60 }
 0x200   : > { %v2000_v47 = vpop.f32.mrf.mxu0 }
 0x201   : > { %v2001_v6 = vadd.f32 %v2000_v47, %v1637_v59 }
 0x202   : > { %v2004_v48 = vpop.f32.mrf.mxu0 }
 0x203   : > { %v2005_v5 = vadd.f32 %v2004_v48, %v1633_v60 }
 0x204   : > { %v2006_v49 = vpop.f32.mrf.mxu0 }
 0x205   : > { %v2007_v12 = vadd.f32 %v2006_v49, %v1637_v59 }
 0x206   : > { %v2008_v50 = vpop.f32.mrf.mxu0 }
 0x207   : > { %v2009_v61 = vadd.f32 %v2008_v50, %v1633_v60 }
 0x208   : > { %v2010_v51 = vpop.f32.mrf.mxu0 }
 0x209   : > { %v2011_v16 = vadd.f32 %v2010_v51, %v1637_v59 }
 0x20a   : > { %v2014_v52 = vpop.f32.mrf.mxu0 }
 0x20b   : > { %v2015_v3 = vadd.f32 %v2014_v52, %v1633_v60 }
 0x20c   : > { %v2016_v1 = vpop.f32.mrf.mxu0 }
 0x20d   : > { %v2017_v11 = vadd.f32 %v2016_v1, %v1637_v59  ;;  %v3346_v1 = vld [vmem:[%s4166_s7 + $0x20] sm:$0xff]  }
 0x20e   : > { %v2018_v34 = vpop.f32.mrf.mxu0  ;;  %2972 = vmatprep.subr.bf16.mxu1 %v3346_v1 }
 0x20f   : > { %v2019_v54 = vadd.f32 %v2018_v34, %v1633_v60  ;;  %2973 = vmatpush3.bf16.msra.mxu1 %v3346_v1 }
 0x210   : > { %v2020_v57 = vpop.f32.mrf.mxu0 }
 0x211   : > { %v2021_v27 = vadd.f32 %v2020_v57, %v1637_v59 }
 0x212   : > { %v2024_v17 = vpop.f32.mrf.mxu0 }
 0x213   : > { %v2025_v47 = vadd.f32 %v2024_v17, %v1633_v60 }
 0x214   : > { %v2026_v23 = vpop.f32.mrf.mxu0 }
 0x215   : > { %v2027_v43 = vadd.f32 %v2026_v23, %v1637_v59 }
 0x216   : > { %v2028_v28 = vpop.f32.mrf.mxu0 }
 0x217   : > { %v2029_v41 = vadd.f32 %v2028_v28, %v1633_v60  ;;  %v3348_v60 = vld [vmem:[%s4166_s7 + $0x10] sm:$0xff]  }
 0x218   : > { %v2030_v38 = vpop.f32.mrf.mxu0 }
 0x219   : > { %v2031_v46 = vadd.f32 %v2030_v38, %v1637_v59  ;;  %v3347_v59 = vld [vmem:[%s4166_s7 + $0x18] sm:$0xff]   ;;  %v2884_v38 = vld [vmem:[%s4167_s8] ss:$0 sm:$0xff] }
 0x21a   : > { %2974 = vmatprep.subr.bf16.mxu1 %v3347_v59 }
 0x21b   : > { %2975 = vmatpush3.bf16.msra.mxu1 %v3347_v59 }
 0x21c   : > { %2976 = vmatprep.subr.bf16.mxu1 %v3348_v60 }
 0x21f   : > { %2977 = vmatpush3.bf16.msra.mxu1 %v3348_v60 }
 0x23a   : > { %v2067_v58 = vpop.f32.mrf.mxu1 }
 0x23b   : > { %v2068_v9 = vadd.f32 %v2067_v58, %v1995_v7 }
 0x23c   : > { %v2069_v4 = vpop.f32.mrf.mxu1 }
 0x23d   : > { %v2070_v45 = vadd.f32 %v2069_v4, %v1997_v25  ;;  %v3349_v4 = vld [vmem:[%s4166_s7 + $0x8] sm:$0xff]  }
 0x23e   : > { %v2071_v24 = vpop.f32.mrf.mxu1  ;;  %2978 = vmatprep.subr.bf16.mxu1 %v3349_v4 }
 0x23f   : > { %v2072_v35 = vadd.f32 %v2071_v24, %v1999_v13  ;;  %2979 = vmatpush3.bf16.msra.mxu1 %v3349_v4  ;;  %v3350_v13 = vld [vmem:[%s4166_s7] sm:$0xff]   ;;  %v3351_v24 = vld [vmem:[%s4168_s9 + $0x18] sm:$0xff]  }
 0x240   : > { %v2073_v44 = vpop.f32.mrf.mxu1  ;;  %2980 = vmatprep.subr.bf16.mxu1 %v3350_v13  ;;  %v2893_v4 = vld [vmem:[%s4169_s10] ss:$0 sm:$0xff] }
 0x241   : > { %v2074_v8 = vadd.f32 %v2073_v44, %v2001_v6  ;;  %v2139_v62 = vpack.c.bf16 %v2072_v35, %v2068_v9  ;;  %v2867_v35 = vld [vmem:[%s4165_s6] ss:$0 sm:$0xff] }
 0x242   : > { %v2077_v10 = vpop.f32.mrf.mxu1 }
 0x243   : > { %v2140_v56 = vpack.c.bf16 %v2074_v8, %v2070_v45  ;;  %v2078_v15 = vadd.f32 %v2077_v10, %v2005_v5  ;;  %2981 = vmatpush3.bf16.msra.mxu1 %v3350_v13 }
 0x244   : > { %v2079_v2 = vpop.f32.mrf.mxu1  ;;  %2990 = vmatprep.subr.bf16.mxu1 %v3351_v24 }
 0x245   : > { %2281 = vmatprep.mubr.bf16.mxu0 %v2140_v56  ;;  %v2080_v20 = vadd.f32 %v2079_v2, %v2007_v12 }
 0x246   : > { %v2081_v0 = vpop.f32.mrf.mxu1  ;;  %2282 = vmatmul.mubr.bf16.vlgmr.msra.gmra.mxu0 %v2139_v62 }
 0x247   : > { %v2082_v18 = vadd.f32 %v2081_v0, %v2009_v61 }
 0x248   : > { %v2083_v19 = vpop.f32.mrf.mxu1 }
 0x249   : > { %v2084_v14 = vadd.f32 %v2083_v19, %v2011_v16  ;;  %v2141_v26 = vpack.c.bf16 %v2082_v18, %v2078_v15 }
 0x24a   : > { %v2087_v21 = vpop.f32.mrf.mxu1 }
 0x24b   : > { %v2142_v22 = vpack.c.bf16 %v2084_v14, %v2080_v20  ;;  %v2088_v33 = vadd.f32 %v2087_v21, %v2015_v3 }
 0x24c   : > { %v2089_v53 = vpop.f32.mrf.mxu1 }
 0x24d   : > { %2289 = vmatprep.mubr.bf16.mxu0 %v2142_v22  ;;  %v2090_v31 = vadd.f32 %v2089_v53, %v2017_v11 }
 0x24e   : > { %v2091_v63 = vpop.f32.mrf.mxu1  ;;  %2290 = vmatmul.mubr.bf16.gmra.mxu0 %v2141_v26 }
 0x24f   : > { %v2092_v29 = vadd.f32 %v2091_v63, %v2019_v54 }
 0x250   : > { %v2093_v30 = vpop.f32.mrf.mxu1 }
 0x251   : > { %v2094_v32 = vadd.f32 %v2093_v30, %v2021_v27  ;;  %v2143_v39 = vpack.c.bf16 %v2092_v29, %v2088_v33  ;;  %v3352_v30 = vld [vmem:[%s4168_s9 + $0x10] sm:$0xff]  }
 0x252   : > { %v2097_v36 = vpop.f32.mrf.mxu1 }
 0x253   : > { %v2144_v37 = vpack.c.bf16 %v2094_v32, %v2090_v31  ;;  %v2098_v52 = vadd.f32 %v2097_v36, %v2025_v47  ;;  %v3353_v31 = vld [vmem:[%s4168_s9 + $0x8] sm:$0xff]   ;;  %v3354_v32 = vld [vmem:[%s4168_s9] sm:$0xff]  }
 0x254   : > { %v2099_v40 = vpop.f32.mrf.mxu1 }
 0x255   : > { %2297 = vmatprep.mubr.bf16.mxu0 %v2144_v37  ;;  %v2100_v50 = vadd.f32 %v2099_v40, %v2027_v43 }
 0x256   : > { %v2101_v42 = vpop.f32.mrf.mxu1  ;;  %2298 = vmatmul.mubr.bf16.gmra.mxu0 %v2143_v39 }
 0x257   : > { %v2102_v48 = vadd.f32 %v2101_v42, %v2029_v41 }
 0x258   : > { %v2103_v49 = vpop.f32.mrf.mxu1 }
 0x259   : > { %v2104_v51 = vadd.f32 %v2103_v49, %v2031_v46  ;;  %v2145_v58 = vpack.c.bf16 %v2102_v48, %v2098_v52 }
 0x25b   : > { %v2146_v55 = vpack.c.bf16 %v2104_v51, %v2100_v50 }
 0x25d   : > { %2305 = vmatprep.mubr.bf16.mxu0 %v2146_v55 }
 0x25e   : > { %2306 = vmatmul.mubr.bf16.gmra.mxu0 %v2145_v58 }
 0x306   : > { %v2922_v25 = vpop.f32.mrf.mxu0 }
 0x308   : > { %v2923_v6 = vpop.f32.mrf.mxu0 }
 0x309   : > { %v2924_v34 = vadd.f32 %v2923_v6, %v2922_v25 }
 0x30a   : > { %v2925_v7 = vpop.f32.mrf.mxu0 }
 0x30b   : > { %v2284_v9 = vadd.f32 %v2924_v34, %v2867_v35 }
 0x30c   : > { %v2926_v44 = vpop.f32.mrf.mxu0 }
 0x30d   : > { %v2927_v45 = vadd.f32 %v2926_v44, %v2925_v7 }
 0x30e   : > { %v2928_v8 = vpop.f32.mrf.mxu0 }
 0x30f   : > { %v2287_v10 = vadd.f32 %v2927_v45, %v2867_v35 }
 0x310   : > { %v2929_v56 = vpop.f32.mrf.mxu0 }
 0x311   : > { %v2331_v57 = vpack.c.bf16 %v2287_v10, %v2284_v9  ;;  %v2930_v2 = vadd.f32 %v2929_v56, %v2928_v8 }
 0x312   : > { %v2931_v62 = vpop.f32.mrf.mxu0 }
 0x313   : > { %2982 = vmatprep.mubr.bf16.mxu1 %v2331_v57  ;;  %v2292_v16 = vadd.f32 %v2930_v2, %v2867_v35 }
 0x314   : > { %v2932_v61 = vpop.f32.mrf.mxu0 }
 0x315   : > { %v2933_v0 = vadd.f32 %v2932_v61, %v2931_v62 }
 0x316   : > { %v2934_v12 = vpop.f32.mrf.mxu0 }
 0x317   : > { %v2295_v5 = vadd.f32 %v2933_v0, %v2867_v35 }
 0x318   : > { %v2935_v17 = vpop.f32.mrf.mxu0 }
 0x319   : > { %v2332_v18 = vpack.c.bf16 %v2295_v5, %v2292_v16  ;;  %v2936_v20 = vadd.f32 %v2935_v17, %v2934_v12 }
 0x31a   : > { %v2937_v19 = vpop.f32.mrf.mxu0 }
 0x31b   : > { %2983 = vmatmul.mubr.bf16.vlgmr.msra.gmra.mxu1 %v2332_v18  ;;  %v2300_v22 = vadd.f32 %v2936_v20, %v2867_v35 }
 0x31c   : > { %v2938_v14 = vpop.f32.mrf.mxu0  ;;  %2991 = vmatpush3.bf16.msra.mxu1 %v3351_v24 }
 0x31d   : > { %v2939_v15 = vadd.f32 %v2938_v14, %v2937_v19  ;;  %2992 = vmatprep.subr.bf16.mxu1 %v3352_v30 }
 0x31e   : > { %v2940_v21 = vpop.f32.mrf.mxu0 }
 0x31f   : > { %v2303_v23 = vadd.f32 %v2939_v15, %v2867_v35 }
 0x320   : > { %v2941_v26 = vpop.f32.mrf.mxu0  ;;  %2993 = vmatpush3.bf16.msra.mxu1 %v3352_v30 }
 0x321   : > { %v2333_v53 = vpack.c.bf16 %v2303_v23, %v2300_v22  ;;  %v2942_v63 = vadd.f32 %v2941_v26, %v2940_v21  ;;  %2994 = vmatprep.subr.bf16.mxu1 %v3353_v31 }
 0x322   : > { %v2943_v54 = vpop.f32.mrf.mxu0 }
 0x323   : > { %2986 = vmatprep.mubr.bf16.mxu1 %v2333_v53  ;;  %v2308_v3 = vadd.f32 %v2942_v63, %v2867_v35 }
 0x324   : > { %v2944_v11 = vpop.f32.mrf.mxu0  ;;  %2995 = vmatpush3.bf16.msra.mxu1 %v3353_v31 }
 0x325   : > { %v2945_v27 = vadd.f32 %v2944_v11, %v2943_v54  ;;  %2996 = vmatprep.subr.bf16.mxu1 %v3354_v32 }
 0x327   : > { %v2311_v28 = vadd.f32 %v2945_v27, %v2867_v35 }
 0x328   : > { %2997 = vmatpush3.bf16.msra.mxu1 %v3354_v32 }
 0x329   : > { %v2334_v29 = vpack.c.bf16 %v2311_v28, %v2308_v3 }
 0x32b   : > { %2987 = vmatmul.mubr.bf16.gmra.mxu1 %v2334_v29 }
 0x3db   : > { %v2984_v33 = vpop.f32.mrf.mxu1 }
 0x3dc   : > { %v2432_v43 = vadd.f32 %v2984_v33, %v2884_v38 }
 0x3dd   : > { %v2423_v36 = vpop.f32.mrf.mxu1 }
 0x3de   : > { %v2424_v41 = vadd.f32 %v2884_v38, %v2423_v36 }
 0x3df   : > { %v2985_v37 = vpop.f32.mrf.mxu1 }
 0x3e0   : > { %v2435_v39 = vadd.f32 %v2985_v37, %v2884_v38 }
 0x3e1   : > { %v2426_v40 = vpop.f32.mrf.mxu1 }
 0x3e2   : > { %v2427_v42 = vadd.f32 %v2884_v38, %v2426_v40  ;;  %v2464_v47 = vpack.c.bf16 %v2435_v39, %v2432_v43 }
 0x3e4   : > { %v2463_v46 = vpack.c.bf16 %v2427_v42, %v2424_v41 }
 0x3e6   : > { %2998 = vmatprep.mubr.msk.bf16.mxu1 %vm2497_vm0, %v2463_v46 }
 0x3e7   : > { %2999 = vmatmul.mubr.msk.bf16.vlgmr.msra.gmra.mxu1 %vm2497_vm0, %v2464_v47 }
 0x3eb   : > { %v2988_v48 = vpop.f32.mrf.mxu1 }
 0x3ec   : > { %v2448_v1 = vadd.f32 %v2988_v48, %v2884_v38 }
 0x3ed   : > { %v2439_v49 = vpop.f32.mrf.mxu1 }
 0x3ee   : > { %v2440_v55 = vadd.f32 %v2884_v38, %v2439_v49 }
 0x3ef   : > { %v2989_v50 = vpop.f32.mrf.mxu1 }
 0x3f0   : > { %v2451_v51 = vadd.f32 %v2989_v50, %v2884_v38 }
 0x3f1   : > { %v2442_v52 = vpop.f32.mrf.mxu1 }
 0x3f2   : > { %v2443_v58 = vadd.f32 %v2884_v38, %v2442_v52  ;;  %v2466_v60 = vpack.c.bf16 %v2451_v51, %v2448_v1 }
 0x3f4   : > { %v2465_v59 = vpack.c.bf16 %v2443_v58, %v2440_v55 }
 0x3f6   : > { %3002 = vmatprep.mubr.msk.bf16.mxu1 %vm2497_vm0, %v2465_v59 }
 0x3f7   : > { %3003 = vmatmul.mubr.msk.bf16.gmra.mxu1 %vm2497_vm0, %v2466_v60 }
 0x4a7   : > { %v3000_v13 = vpop.f32.mrf.mxu1 }
 0x4a8   : > { %v2553_v24 = vadd.f32 %v3000_v13, %v2893_v4 }
 0x4a9   : > { %v2544_v25 = vpop.f32.mrf.mxu1 }
 0x4aa   : > { %2578 = vst.msk [vmem:[%s416_s12 + $0x10] sm:$0xff] %vm2575_vm1, %v2553_v24  ;;  %v2545_v6 = vadd.f32 %v2893_v4, %v2544_v25 }
 0x4ab   : > { %v3001_v7 = vpop.f32.mrf.mxu1 }
 0x4ac   : > { %2576 = vst.msk [vmem:[%s416_s12] sm:$0xff] %vm2575_vm1, %v2545_v6  ;;  %v2556_v34 = vadd.f32 %v3001_v7, %v2893_v4 }
 0x4ad   : > { %v2547_v35 = vpop.f32.mrf.mxu1 }
 0x4ae   : > { %2579 = vst.msk [vmem:[%s416_s12 + $0x18] sm:$0xff] %vm2575_vm1, %v2556_v34  ;;  %v2548_v44 = vadd.f32 %v2893_v4, %v2547_v35 }
 0x4b0   : > { %2577 = vst.msk [vmem:[%s416_s12 + $0x8] sm:$0xff] %vm2575_vm1, %v2548_v44 }
 0x4b7   : > { %v3004_v45 = vpop.f32.mrf.mxu1 }
 0x4b8   : > { %v2569_v8 = vadd.f32 %v3004_v45, %v2893_v4 }
 0x4b9   : > { %v2560_v9 = vpop.f32.mrf.mxu1 }
 0x4ba   : > { %2582 = vst.msk [vmem:[%s416_s12 + $0x30] sm:$0xff] %vm2575_vm1, %v2569_v8  ;;  %v2561_v10 = vadd.f32 %v2893_v4, %v2560_v9 }
 0x4bb   : > { %v3005_v56 = vpop.f32.mrf.mxu1 }
 0x4bc   : > { %2580 = vst.msk [vmem:[%s416_s12 + $0x20] sm:$0xff] %vm2575_vm1, %v2561_v10  ;;  %v2572_v57 = vadd.f32 %v3005_v56, %v2893_v4 }
 0x4bd   : > { %v2563_v62 = vpop.f32.mrf.mxu1 }
 0x4be   : > { %2584 = vst.msk [vmem:[%s416_s12 + $0x38] sm:$0xf] %vm2583_vm2, %v2572_v57  ;;  %v2564_v2 = vadd.f32 %v2893_v4, %v2563_v62 }
 0x4c0   : > { %2581 = vst.msk [vmem:[%s416_s12 + $0x28] sm:$0xff] %vm2575_vm1, %v2564_v2 }
 0x4c1 PF: > { %s23_s17 = sadd.s32 1, %s3421_s17  }
 0x4c2   : > { %p20_p3 = scmp.ge.s32.totalorder %s23_s17, 4  }
 0x4c4   :  { %22 = sbr.rel (!%p20_p3) target bundleno = 2 (0x2), region = 103 }
 0x4c9   :  { %2606 = vsyncpa [#allocation3], 1 }
 0x4ca   :  { %2608 = vsyncpa [#allocation3 + $0x1], 1 }
 0x4cb   :  { %2609 = vsyncpa [#allocation5], 1 }

</bundles_post_ra>
